<compile_context>
chip_gen: v7x
topology: tpu7x:2x2x1
jax: 0.10.0
libtpu: 0.0.40
codegen_flags: <defaults>
</compile_context>

<pallas_src>
import jax
import jax.numpy as jnp
from jax.experimental import pallas as pl
from jax.experimental.pallas import tpu as pltpu

_LANE = 128
_SUBLANE = 8


def _round_up(n, m):
    return ((n + m - 1) // m) * m


def _pad2(a, rows, cols):
    r, c = a.shape
    return jnp.pad(a, ((0, rows - r), (0, cols - c)))


def fcnn_surv_kernel(x_ref,
                     w1_ref, b1_ref,
                     w2_ref, b2_ref,
                     w3_ref, b3_ref,
                     w4_ref, b4_ref,
                     o_ref):
    # Dots run in the weights' dtype (bf16 or f32) with f32 MXU accumulation;
    # bias add / ReLU stay in f32 on the VPU.
    cd = w1_ref.dtype

    # x is loaded in its stored dtype (f32) and cast on the VPU — no wrapper
    # cast/pad pass over x in HBM.
    x = x_ref[...].astype(cd)

    # layer1 + relu   (dropout1 is identity in eval mode)
    h = jnp.dot(x, w1_ref[...], preferred_element_type=jnp.float32)
    h = jnp.maximum(h + b1_ref[...], 0.0)
    # layer2 + relu   (dropout2 is identity in eval mode)
    h = jnp.dot(h.astype(cd), w2_ref[...], preferred_element_type=jnp.float32)
    h = jnp.maximum(h + b2_ref[...], 0.0)
    # layer3 + relu   (dropout3 is identity in eval mode)
    h = jnp.dot(h.astype(cd), w3_ref[...], preferred_element_type=jnp.float32)
    h = jnp.maximum(h + b3_ref[...], 0.0)
    # layer4 (no activation)
    h = jnp.dot(h.astype(cd), w4_ref[...], preferred_element_type=jnp.float32)
    o_ref[...] = (h + b4_ref[...]).astype(o_ref.dtype)


def fcnn_surv_forward(x, params, *, block_batch=2048,
                      compute_dtype=jnp.bfloat16, out_dtype=None):
    """x: (B, num_feat) float32. params: (in,out) weights and (1,out) biases.

    compute_dtype: jnp.bfloat16 (default; native MXU rate on v6e/v7x, f32
    accumulation) or jnp.float32 (exact).  out_dtype: output element type
    (default: x.dtype)."""
    B, F = x.shape
    w1, b1 = params["w1"], params["b1"]
    w2, b2 = params["w2"], params["b2"]
    w3, b3 = params["w3"], params["b3"]
    w4, b4 = params["w4"], params["b4"]
    H1, H2, H3, O = w1.shape[1], w2.shape[1], w3.shape[1], w4.shape[1]
    if out_dtype is None:
        out_dtype = x.dtype

    # --- lane-dense (multiple-of-128) hidden / output dims --------------------
    # NOTE: the feature dim F of x is intentionally NOT padded.
    H1p = _round_up(H1, _LANE)
    H2p = _round_up(H2, _LANE)
    H3p = _round_up(H3, _LANE)
    Op = _round_up(O, _LANE)

    # --- batch tile selection: bounded padding (<= 8*steps rows) --------------
    B8 = _round_up(B, _SUBLANE)
    steps = max(1, pl.cdiv(B8, block_batch))
    bm = _round_up(pl.cdiv(B8, steps), _SUBLANE)
    Bp = steps * bm
    grid = (steps,)

    # --- operands --------------------------------------------------------------
    # x: only batch padding (if any); kept in its original dtype.
    x_in = x if Bp == B else jnp.pad(x, ((0, Bp - B), (0, 0)))
    # weights (tiny): zero-pad hidden dims and cast once; zero rows/cols + zero
    # bias + ReLU keep padded lanes at exactly 0.
    cd = compute_dtype
    f32 = jnp.float32
    w1_p = _pad2(w1.astype(cd), F, H1p)
    w2_p = _pad2(w2.astype(cd), H1p, H2p)
    w3_p = _pad2(w3.astype(cd), H2p, H3p)
    w4_p = _pad2(w4.astype(cd), H3p, Op)
    b1_p = _pad2(b1.astype(f32).reshape(1, -1), 1, H1p)
    b2_p = _pad2(b2.astype(f32).reshape(1, -1), 1, H2p)
    b3_p = _pad2(b3.astype(f32).reshape(1, -1), 1, H3p)
    b4_p = _pad2(b4.astype(f32).reshape(1, -1), 1, Op)

    def rep(shape):
        # Weights / biases: same full block for every grid step (no re-DMA).
        # (pipeline_mode=pl.Buffered(1) would also drop the second VMEM buffer;
        #  left at the default since the whole model is <0.2 MB.)
        return pl.BlockSpec(shape, lambda i: (0,) * len(shape))

    w_isize = jnp.dtype(cd).itemsize
    flops = 2 * Bp * (F * H1p + H1p * H2p + H2p * H3p + H3p * Op)
    bytes_accessed = (
        Bp * F * jnp.dtype(x.dtype).itemsize                      # x
        + Bp * Op * jnp.dtype(out_dtype).itemsize                 # out
        + (F * H1p + H1p * H2p + H2p * H3p + H3p * Op) * w_isize  # weights
        + (H1p + H2p + H3p + Op) * 4                              # biases
    )

    out_p = pl.pallas_call(
        fcnn_surv_kernel,
        out_shape=jax.ShapeDtypeStruct((Bp, Op), out_dtype),
        grid=grid,
        in_specs=[
            pl.BlockSpec((bm, F), lambda i: (i, 0)),   # x: batch tile, raw F lanes
            rep(w1_p.shape), rep(b1_p.shape),
            rep(w2_p.shape), rep(b2_p.shape),
            rep(w3_p.shape), rep(b3_p.shape),
            rep(w4_p.shape), rep(b4_p.shape),
        ],
        out_specs=pl.BlockSpec((bm, Op), lambda i: (i, 0)),
        compiler_params=pltpu.CompilerParams(
            dimension_semantics=("parallel",)),
        cost_estimate=pl.CostEstimate(
            flops=flops, transcendentals=0, bytes_accessed=bytes_accessed),
    )(x_in, w1_p, b1_p, w2_p, b2_p, w3_p, b3_p, w4_p, b4_p)

    # strip batch padding and the lane padding of the output columns
    return out_p[:B, :O]


def init_params(key, num_feat, num_diseases, time_span, dtype=jnp.float32):
    """Deterministic synthetic init matching the PyTorch module's shapes.
    Weights stored as (in_features, out_features); biases as (1, out_features)."""
    dims = [
        (num_feat, num_feat * 3),
        (num_feat * 3, num_feat * 5),
        (num_feat * 5, num_feat * 3),
        (num_feat * 3, num_diseases * time_span),
    ]
    params = {}
    for idx, (din, dout) in enumerate(dims, start=1):
        key, kw, kb = jax.random.split(key, 3)
        bound = 1.0 / jnp.sqrt(jnp.asarray(din, dtype))
        params[f"w{idx}"] = jax.random.uniform(
            kw, (din, dout), dtype, minval=-bound, maxval=bound)
        params[f"b{idx}"] = jax.random.uniform(
            kb, (1, dout), dtype, minval=-bound, maxval=bound)
    return params


def reference_forward(x, params):
    h = jnp.maximum(x @ params["w1"] + params["b1"], 0.0)
    h = jnp.maximum(h @ params["w2"] + params["b2"], 0.0)
    h = jnp.maximum(h @ params["w3"] + params["b3"], 0.0)
    return h @ params["w4"] + params["b4"]


if __name__ == "__main__":
    num_feat, num_diseases, time_span = 32, 4, 8
    batch = 512

    key = jax.random.PRNGKey(0)
    key, kx = jax.random.split(key)
    x = jax.random.normal(kx, (batch, num_feat), jnp.float32)
    params = init_params(key, num_feat, num_diseases, time_span)

    ref = reference_forward(x, params)

    # f32 compute path: exact match vs reference.
    out_f32 = jax.block_until_ready(
        fcnn_surv_forward(x, params, compute_dtype=jnp.float32))
    assert out_f32.shape == (batch, num_diseases * time_span)
    assert out_f32.dtype == x.dtype
    assert jnp.allclose(out_f32, ref, atol=1e-5, rtol=1e-5), "f32 mismatch vs reference"

    # Default (bf16 compute, f32 accumulation) path: loose tolerance.
    out_bf16 = jax.block_until_ready(fcnn_surv_forward(x, params))
    assert out_bf16.shape == (batch, num_diseases * time_span)
    assert jnp.allclose(out_bf16, ref, atol=1e-1, rtol=1e-1), "bf16 mismatch vs reference"

    # Non-divisible / padded-batch path (exercises bounded batch padding).
    out_odd = jax.block_until_ready(
        fcnn_surv_forward(x[:123], params, block_batch=64,
                          compute_dtype=jnp.float32))
    assert out_odd.shape == (123, num_diseases * time_span)
    assert jnp.allclose(out_odd, ref[:123], atol=1e-5, rtol=1e-5), "odd-batch mismatch"

    print("KERNEL_OK")
</pallas_src>

<mosaic_0001>
module attributes {stable_mosaic.version = 11 : i64} {
  func.func @fcnn_surv_kernel(%arg0: i32, %arg1: memref<512x32xf32, #tpu.memory_space<vmem>>, %arg2: memref<32x128xf32, #tpu.memory_space<vmem>>, %arg3: memref<1x128xf32, #tpu.memory_space<vmem>>, %arg4: memref<128x256xf32, #tpu.memory_space<vmem>>, %arg5: memref<1x256xf32, #tpu.memory_space<vmem>>, %arg6: memref<256x128xf32, #tpu.memory_space<vmem>>, %arg7: memref<1x128xf32, #tpu.memory_space<vmem>>, %arg8: memref<128x128xf32, #tpu.memory_space<vmem>>, %arg9: memref<1x128xf32, #tpu.memory_space<vmem>>, %arg10: memref<512x128xf32, #tpu.memory_space<vmem>>) attributes {dimension_semantics = [#tpu.dimension_semantics<parallel>], iteration_bounds = array<i64: 1>, scalar_prefetch = 0 : i64, scratch_operands = 0 : i64, tpu.core_type = #tpu.core_type<tc>, window_params = [{transform_indices = @transform_0, window_bounds = array<i64: 512, 32>}, {pipeline_mode = #tpu.pipeline_mode<synchronous>, transform_indices = @transform_1, window_bounds = array<i64: 32, 128>}, {pipeline_mode = #tpu.pipeline_mode<synchronous>, transform_indices = @transform_2, window_bounds = array<i64: 1, 128>}, {pipeline_mode = #tpu.pipeline_mode<synchronous>, transform_indices = @transform_3, window_bounds = array<i64: 128, 256>}, {pipeline_mode = #tpu.pipeline_mode<synchronous>, transform_indices = @transform_4, window_bounds = array<i64: 1, 256>}, {pipeline_mode = #tpu.pipeline_mode<synchronous>, transform_indices = @transform_5, window_bounds = array<i64: 256, 128>}, {pipeline_mode = #tpu.pipeline_mode<synchronous>, transform_indices = @transform_6, window_bounds = array<i64: 1, 128>}, {pipeline_mode = #tpu.pipeline_mode<synchronous>, transform_indices = @transform_7, window_bounds = array<i64: 128, 128>}, {pipeline_mode = #tpu.pipeline_mode<synchronous>, transform_indices = @transform_8, window_bounds = array<i64: 1, 128>}, {transform_indices = @transform_9, window_bounds = array<i64: 512, 128>}]} {
    %c0 = arith.constant 0 : index
    %c0_0 = arith.constant 0 : index
    %0 = vector.load %arg1[%c0, %c0_0] : memref<512x32xf32, #tpu.memory_space<vmem>>, vector<512x32xf32>
    %c0_1 = arith.constant 0 : index
    %c0_2 = arith.constant 0 : index
    %1 = vector.load %arg2[%c0_1, %c0_2] : memref<32x128xf32, #tpu.memory_space<vmem>>, vector<32x128xf32>
    %cst = arith.constant dense<0.000000e+00> : vector<512x128xf32>
    %2 = tpu.matmul %0, %1, %cst {dimension_numbers = #tpu.dot_dimension_numbers<[1], [0], [0], [1], [0, 0, 1, 1], [], []>} : vector<512x32xf32>, vector<32x128xf32>, vector<512x128xf32> -> vector<512x128xf32>
    %c0_3 = arith.constant 0 : index
    %c0_4 = arith.constant 0 : index
    %3 = vector.load %arg3[%c0_3, %c0_4] : memref<1x128xf32, #tpu.memory_space<vmem>>, vector<1x128xf32>
    %4 = vector.broadcast %3 : vector<1x128xf32> to vector<512x128xf32>
    %5 = arith.addf %2, %4 : vector<512x128xf32>
    %cst_5 = arith.constant 0.000000e+00 : f32
    %6 = vector.broadcast %cst_5 : f32 to vector<512x128xf32>
    %7 = arith.maximumf %5, %6 : vector<512x128xf32>
    %c0_6 = arith.constant 0 : index
    %c0_7 = arith.constant 0 : index
    %8 = vector.load %arg4[%c0_6, %c0_7] : memref<128x256xf32, #tpu.memory_space<vmem>>, vector<128x256xf32>
    %cst_8 = arith.constant dense<0.000000e+00> : vector<512x256xf32>
    %9 = tpu.matmul %7, %8, %cst_8 {dimension_numbers = #tpu.dot_dimension_numbers<[1], [0], [0], [1], [0, 0, 1, 1], [], []>} : vector<512x128xf32>, vector<128x256xf32>, vector<512x256xf32> -> vector<512x256xf32>
    %c0_9 = arith.constant 0 : index
    %c0_10 = arith.constant 0 : index
    %10 = vector.load %arg5[%c0_9, %c0_10] : memref<1x256xf32, #tpu.memory_space<vmem>>, vector<1x256xf32>
    %11 = vector.broadcast %10 : vector<1x256xf32> to vector<512x256xf32>
    %12 = arith.addf %9, %11 : vector<512x256xf32>
    %cst_11 = arith.constant 0.000000e+00 : f32
    %13 = vector.broadcast %cst_11 : f32 to vector<512x256xf32>
    %14 = arith.maximumf %12, %13 : vector<512x256xf32>
    %c0_12 = arith.constant 0 : index
    %c0_13 = arith.constant 0 : index
    %15 = vector.load %arg6[%c0_12, %c0_13] : memref<256x128xf32, #tpu.memory_space<vmem>>, vector<256x128xf32>
    %cst_14 = arith.constant dense<0.000000e+00> : vector<512x128xf32>
    %16 = tpu.matmul %14, %15, %cst_14 {dimension_numbers = #tpu.dot_dimension_numbers<[1], [0], [0], [1], [0, 0, 1, 1], [], []>} : vector<512x256xf32>, vector<256x128xf32>, vector<512x128xf32> -> vector<512x128xf32>
    %c0_15 = arith.constant 0 : index
    %c0_16 = arith.constant 0 : index
    %17 = vector.load %arg7[%c0_15, %c0_16] : memref<1x128xf32, #tpu.memory_space<vmem>>, vector<1x128xf32>
    %18 = vector.broadcast %17 : vector<1x128xf32> to vector<512x128xf32>
    %19 = arith.addf %16, %18 : vector<512x128xf32>
    %cst_17 = arith.constant 0.000000e+00 : f32
    %20 = vector.broadcast %cst_17 : f32 to vector<512x128xf32>
    %21 = arith.maximumf %19, %20 : vector<512x128xf32>
    %c0_18 = arith.constant 0 : index
    %c0_19 = arith.constant 0 : index
    %22 = vector.load %arg8[%c0_18, %c0_19] : memref<128x128xf32, #tpu.memory_space<vmem>>, vector<128x128xf32>
    %cst_20 = arith.constant dense<0.000000e+00> : vector<512x128xf32>
    %23 = tpu.matmul %21, %22, %cst_20 {dimension_numbers = #tpu.dot_dimension_numbers<[1], [0], [0], [1], [0, 0, 1, 1], [], []>} : vector<512x128xf32>, vector<128x128xf32>, vector<512x128xf32> -> vector<512x128xf32>
    %c0_21 = arith.constant 0 : index
    %c0_22 = arith.constant 0 : index
    %24 = vector.load %arg9[%c0_21, %c0_22] : memref<1x128xf32, #tpu.memory_space<vmem>>, vector<1x128xf32>
    %25 = vector.broadcast %24 : vector<1x128xf32> to vector<512x128xf32>
    %26 = arith.addf %23, %25 : vector<512x128xf32>
    %c0_23 = arith.constant 0 : index
    %c0_24 = arith.constant 0 : index
    %27 = vector.load %arg10[%c0_23, %c0_24] : memref<512x128xf32, #tpu.memory_space<vmem>>, vector<512x128xf32>
    tpu.vector_store %arg10[%c0_23, %c0_24], %26 {strides = array<i32>} : memref<512x128xf32, #tpu.memory_space<vmem>>, vector<512x128xf32>,
    return
  }
  func.func @transform_0(%arg0: i32) -> (i32, i32) {
    %c0_i32 = arith.constant 0 : i32
    %c0_i32_0 = arith.constant 0 : i32
    return %arg0, %c0_i32 : i32, i32
  }
  func.func @transform_1(%arg0: i32) -> (i32, i32) {
    %c0_i32 = arith.constant 0 : i32
    %c0_i32_0 = arith.constant 0 : i32
    %c0_i32_1 = arith.constant 0 : i32
    return %c0_i32, %c0_i32_0 : i32, i32
  }
  func.func @transform_2(%arg0: i32) -> (i32, i32) {
    %c0_i32 = arith.constant 0 : i32
    %c0_i32_0 = arith.constant 0 : i32
    %c0_i32_1 = arith.constant 0 : i32
    return %c0_i32, %c0_i32_0 : i32, i32
  }
  func.func @transform_3(%arg0: i32) -> (i32, i32) {
    %c0_i32 = arith.constant 0 : i32
    %c0_i32_0 = arith.constant 0 : i32
    %c0_i32_1 = arith.constant 0 : i32
    return %c0_i32, %c0_i32_0 : i32, i32
  }
  func.func @transform_4(%arg0: i32) -> (i32, i32) {
    %c0_i32 = arith.constant 0 : i32
    %c0_i32_0 = arith.constant 0 : i32
    %c0_i32_1 = arith.constant 0 : i32
    return %c0_i32, %c0_i32_0 : i32, i32
  }
  func.func @transform_5(%arg0: i32) -> (i32, i32) {
    %c0_i32 = arith.constant 0 : i32
    %c0_i32_0 = arith.constant 0 : i32
    %c0_i32_1 = arith.constant 0 : i32
    return %c0_i32, %c0_i32_0 : i32, i32
  }
  func.func @transform_6(%arg0: i32) -> (i32, i32) {
    %c0_i32 = arith.constant 0 : i32
    %c0_i32_0 = arith.constant 0 : i32
    %c0_i32_1 = arith.constant 0 : i32
    return %c0_i32, %c0_i32_0 : i32, i32
  }
  func.func @transform_7(%arg0: i32) -> (i32, i32) {
    %c0_i32 = arith.constant 0 : i32
    %c0_i32_0 = arith.constant 0 : i32
    %c0_i32_1 = arith.constant 0 : i32
    return %c0_i32, %c0_i32_0 : i32, i32
  }
  func.func @transform_8(%arg0: i32) -> (i32, i32) {
    %c0_i32 = arith.constant 0 : i32
    %c0_i32_0 = arith.constant 0 : i32
    %c0_i32_1 = arith.constant 0 : i32
    return %c0_i32, %c0_i32_0 : i32, i32
  }
  func.func @transform_9(%arg0: i32) -> (i32, i32) {
    %c0_i32 = arith.constant 0 : i32
    %c0_i32_0 = arith.constant 0 : i32
    return %arg0, %c0_i32 : i32, i32
  }
}

</mosaic_0001>

<bundles_post_ra>
// kernel: tpu_custom_call.1
= control target key start
LH: loop header
LB: loop body
LE: loop exit
PB: predicated region body
PF: predicated region fallthrough
CT: control target
= control target key end

     0   :  { %14 = vsyncpa [#allocation3], 0  ;;  %s4165_s0 = inlined_call_operand.vmem [shape: f32[512,32], index: 0, kind: input, shape index: {}]   ;;  %s4166_s1 = inlined_call_operand.hbm [shape: f32[32,128], index: 1, kind: input, shape index: {}]   ;;  %s4167_s2 = inlined_call_operand.vmem [shape: f32[1,128], index: 2, kind: input, shape index: {}]   ;;  %s4168_s3 = inlined_call_operand.vmem [shape: f32[128,256], index: 3, kind: input, shape index: {}]   ;;  %s4169_s4 = inlined_call_operand.vmem [shape: f32[1,256], index: 4, kind: input, shape index: {}]   ;;  %s4170_s5 = inlined_call_operand.vmem [shape: f32[256,128], index: 5, kind: input, shape index: {}]   ;;  %s4171_s6 = inlined_call_operand.vmem [shape: f32[1,128], index: 6, kind: input, shape index: {}]   ;;  %s4172_s7 = inlined_call_operand.vmem [shape: f32[128,128], index: 7, kind: input, shape index: {}]   ;;  %s4173_s8 = inlined_call_operand.vmem [shape: f32[1,128], index: 8, kind: input, shape index: {}]   ;;  %s4174_s9 = inlined_call_operand.hbm [shape: f32[512,128], index: 9, kind: output, shape index: {}]  }
   0x1   :  { %15 = vsyncpa [#allocation4], 0  ;;  %s2999_s30 = smov [#allocation2]   ;;  %s2951_s13 = scalar_lea.hbm %s4166_s1, 512 }
   0x2   :  { %s23_s10 = sshll.u32 %s2999_s30, 4  ;;  %p2952_p0 = scmp.ne.s32.totalorder %s4166_s1, %s2951_s13  ;;  %s24_s10 = int_to_ptr.vmem [resolvable:$true] %s23_s10 }
   0x3   :  { %p2955_p1 = scmp.lt.u32.totalorder %s2951_s13, %s4166_s1 }
   0x5   :  { %p2957_p2 = pnand %p2955_p1, %p2952_p0 }
   0x7   :  { %2960 = shalt.err (!%p2957_p2)
}
   0x8   :  { %s2961_s18 = scalar_lea.vmem %s24_s10, 512  ;;  %p2966_p4 = scmp.lt.s32.totalorder %s24_s10, %s24_s10 }
   0x9   :  { %p2962_p3 = scmp.ne.s32.totalorder %s24_s10, %s2961_s18  ;;  %p2967_p5 = scmp.lt.s32.totalorder %s2961_s18, %s2961_s18 }
   0xb   :  { %p2968_p6 = por %p2967_p5, %p2966_p4 }
   0xd   :  { %p2969_p7 = pnand %p2968_p6, %p2962_p3 }
   0xf   :  { %2972 = shalt.err (!%p2969_p7)
}
  0x10   :  { %s3000_s19 = smov 128   ;;  %s3001_s20 = smov 8  }
  0x11   :  { %29 = dma.hbm_to_vmem [thread:$0]  %s4166_s1, 512, %s24_s10, [#allocation3], %s3000_s19, %s3000_s19, %s3001_s20  }
  0x12   :  { %2995 = dma.done.wait [#allocation3], 512  }
  0x13   :  { %2996 = vsyncadd [#allocation3], 4294966784  ;;  %vm122_vm0 = vcmask 261120   ;;  %v111_v0 = vld [vmem:[#allocation2] sm:$0xff]  ;;  %v112_v1 = vld [vmem:[#allocation2 + $0x8] sm:$0xff] }
  0x14   :  { %v113_v2 = vld [vmem:[#allocation2 + $0x10] sm:$0xff]  ;;  %v2809_v3 = vpack.c.bf16 %v112_v1, %v111_v0  ;;  %v114_v4 = vld [vmem:[#allocation2 + $0x18] sm:$0xff]  ;;  %v47_v5 = vld [vmem:[%s4165_s0] sm:$0xff] }
  0x15   :  { %v2813_v6 = vpack.c.bf16 %v114_v4, %v113_v2  ;;  %2585 = vmatprep.mubr.msk.f32.mxu0 %vm122_vm0, %v47_v5  ;;  %v48_v7 = vld [vmem:[%s4165_s0 + $0x8] sm:$0xff]  ;;  %v49_v8 = vld [vmem:[%s4165_s0 + $0x10] sm:$0xff]  ;;  %v50_v9 = vld [vmem:[%s4165_s0 + $0x18] sm:$0xff] }
  0x16   :  { %2810 = vmatprep.subr.bf16.mxu0 %v2809_v3  ;;  %v51_v10 = vld [vmem:[%s4165_s0 + $0x20] sm:$0xff]  ;;  %v52_v11 = vld [vmem:[%s4165_s0 + $0x28] sm:$0xff]  ;;  %v53_v12 = vld [vmem:[%s4165_s0 + $0x30] sm:$0xff] }
  0x17   :  { %2812 = vmatpush3.bf16.msra.mxu0 %v2809_v3  ;;  %v765_v13 = vld [vmem:[%s4168_s3 + $0x8] sm:$0xff]  ;;  %v767_v14 = vld [vmem:[%s4168_s3 + $0x18] sm:$0xff]  ;;  %v764_v16 = vld [vmem:[%s4168_s3] sm:$0xff] }
  0x18   :  { %2814 = vmatprep.subr.bf16.mxu0 %v2813_v6  ;;  %v2817_v15 = vpack.c.bf16 %v767_v14, %v765_v13  ;;  %v766_v17 = vld [vmem:[%s4168_s3 + $0x10] sm:$0xff]  ;;  %v769_v18 = vld [vmem:[%s4168_s3 + $0x28] sm:$0xff]  ;;  %v771_v20 = vld [vmem:[%s4168_s3 + $0x38] sm:$0xff] }
  0x19   :  { %v2819_v19 = vpack.c.bf16 %v766_v17, %v764_v16  ;;  %v768_v21 = vld [vmem:[%s4168_s3 + $0x20] sm:$0xff]  ;;  %v54_v22 = vld [vmem:[%s4165_s0 + $0x38] sm:$0xff]  ;;  %v2821_v23 = vpack.c.bf16 %v771_v20, %v769_v18  ;;  %v770_v24 = vld [vmem:[%s4168_s3 + $0x30] sm:$0xff] }
  0x1a   :  { %2818 = vmatprep.subr.bf16.mxu1 %v2817_v15  ;;  %v773_v25 = vld [vmem:[%s4168_s3 + $0x48] sm:$0xff]  ;;  %v55_v26 = vld [vmem:[%s4165_s0 + $0x40] sm:$0xff]  ;;  %v2823_v27 = vpack.c.bf16 %v770_v24, %v768_v21  ;;  %v775_v28 = vld [vmem:[%s4168_s3 + $0x58] sm:$0xff] }
  0x1b   :  { %2816 = vmatpush3.bf16.msra.mxu0 %v2813_v6  ;;  %2820 = vmatpush1.bf16.msra.mxu1 %v2819_v19  ;;  %v2825_v29 = vpack.c.bf16 %v775_v28, %v773_v25  ;;  %v772_v30 = vld [vmem:[%s4168_s3 + $0x40] sm:$0xff]  ;;  %v774_v31 = vld [vmem:[%s4168_s3 + $0x50] sm:$0xff]  ;;  %v777_v32 = vld [vmem:[%s4168_s3 + $0x68] sm:$0xff] }
  0x1c   :  { %2822 = vmatprep.subr.bf16.mxu1 %v2821_v23  ;;  %v779_v33 = vld [vmem:[%s4168_s3 + $0x78] sm:$0xff]  ;;  %v56_v34 = vld [vmem:[%s4165_s0 + $0x48] sm:$0xff]  ;;  %v57_v35 = vld [vmem:[%s4165_s0 + $0x50] sm:$0xff]  ;;  %v2827_v36 = vpack.c.bf16 %v774_v31, %v772_v30 }
  0x1d   :  { %v2829_v37 = vpack.c.bf16 %v779_v33, %v777_v32  ;;  %v776_v38 = vld [vmem:[%s4168_s3 + $0x60] sm:$0xff]  ;;  %v778_v39 = vld [vmem:[%s4168_s3 + $0x70] sm:$0xff]  ;;  %v781_v40 = vld [vmem:[%s4168_s3 + $0x88] sm:$0xff] }
  0x1e   :  { %2586 = vmatmul.mubr.msk.f32.vlgmr.msra.gmra.mrb[0].mxu0 %vm122_vm0, %v48_v7  ;;  %v783_v41 = vld [vmem:[%s4168_s3 + $0x98] sm:$0xff]  ;;  %v59_v43 = vld [vmem:[%s4165_s0 + $0x60] sm:$0xff]  ;;  %v2831_v44 = vpack.c.bf16 %v778_v39, %v776_v38  ;;  %v782_v47 = vld [vmem:[%s4168_s3 + $0x90] sm:$0xff] }
  0x1f   :  { %2588 = vmatprep.mubr.msk.f32.mxu0 %vm122_vm0, %v49_v8  ;;  %2824 = vmatpush1.bf16.msra.mxu1 %v2823_v27  ;;  %v58_v42 = vld [vmem:[%s4165_s0 + $0x58] sm:$0xff]  ;;  %v2833_v45 = vpack.c.bf16 %v783_v41, %v781_v40  ;;  %v780_v46 = vld [vmem:[%s4168_s3 + $0x80] sm:$0xff]  ;;  %v785_v48 = vld [vmem:[%s4168_s3 + $0xa8] sm:$0xff] }
  0x20   :  { %2826 = vmatprep.subr.bf16.mxu1 %v2825_v29  ;;  %v787_v49 = vld [vmem:[%s4168_s3 + $0xb8] sm:$0xff]  ;;  %v60_v50 = vld [vmem:[%s4165_s0 + $0x68] sm:$0xff]  ;;  %v61_v51 = vld [vmem:[%s4165_s0 + $0x70] sm:$0xff]  ;;  %v2835_v52 = vpack.c.bf16 %v782_v47, %v780_v46 }
  0x21   :  { %v2837_v53 = vpack.c.bf16 %v787_v49, %v785_v48  ;;  %v784_v54 = vld [vmem:[%s4168_s3 + $0xa0] sm:$0xff]  ;;  %v786_v55 = vld [vmem:[%s4168_s3 + $0xb0] sm:$0xff]  ;;  %v789_v56 = vld [vmem:[%s4168_s3 + $0xc8] sm:$0xff] }
  0x22   :  { %2589 = vmatmul.mubr.msk.f32.gmra.mrb[2].mxu0 %vm122_vm0, %v50_v9  ;;  %v791_v57 = vld [vmem:[%s4168_s3 + $0xd8] sm:$0xff]  ;;  %v63_v59 = vld [vmem:[%s4165_s0 + $0x80] sm:$0xff]  ;;  %v2839_v60 = vpack.c.bf16 %v786_v55, %v784_v54  ;;  %v790_v63 = vld [vmem:[%s4168_s3 + $0xd0] sm:$0xff] }
  0x23   :  { %2591 = vmatprep.mubr.msk.f32.mxu0 %vm122_vm0, %v51_v10  ;;  %2828 = vmatpush1.bf16.msra.mxu1 %v2827_v36  ;;  %v62_v58 = vld [vmem:[%s4165_s0 + $0x78] sm:$0xff]  ;;  %v2841_v61 = vpack.c.bf16 %v791_v57, %v789_v56  ;;  %v788_v62 = vld [vmem:[%s4168_s3 + $0xc0] sm:$0xff]  ;;  %v64_v0 = vld [vmem:[%s4165_s0 + $0x88] sm:$0xff]  ;;  %v3003_v57 = vmov 0.0|0.0  }
  0x24   :  { %2830 = vmatprep.subr.bf16.mxu1 %v2829_v37  ;;  %v65_v1 = vld [vmem:[%s4165_s0 + $0x90] sm:$0xff]  ;;  %v2843_v2 = vpack.c.bf16 %v790_v63, %v788_v62  ;;  %v66_v3 = vld [vmem:[%s4165_s0 + $0x98] sm:$0xff]  ;;  %v67_v4 = vld [vmem:[%s4165_s0 + $0xa0] sm:$0xff]  ;;  %v3002_v37 = vmov 0.0   ;;  %2849 = vmatprep.subr.bf16.mxu0 %v3003_v57 }
  0x25   :  { %v68_v5 = vld [vmem:[%s4165_s0 + $0xa8] sm:$0xff]  ;;  %v69_v6 = vld [vmem:[%s4165_s0 + $0xb0] sm:$0xff]  ;;  %v70_v7 = vld [vmem:[%s4165_s0 + $0xb8] sm:$0xff]  ;;  %872 = vmatprep.mubr.f32.mxu1 %v3002_v37 }
  0x26   :  { %2592 = vmatmul.mubr.msk.f32.gmra.mrb[4].mxu0 %vm122_vm0, %v52_v11  ;;  %v71_v8 = vld [vmem:[%s4165_s0 + $0xc0] sm:$0xff]  ;;  %v72_v9 = vld [vmem:[%s4165_s0 + $0xc8] sm:$0xff]  ;;  %v73_v10 = vld [vmem:[%s4165_s0 + $0xd0] sm:$0xff] }
  0x27   :  { %2594 = vmatprep.mubr.msk.f32.mxu0 %vm122_vm0, %v53_v12  ;;  %2832 = vmatpush1.bf16.msra.mxu1 %v2831_v44  ;;  %v74_v11 = vld [vmem:[%s4165_s0 + $0xd8] sm:$0xff]  ;;  %v75_v12 = vld [vmem:[%s4165_s0 + $0xe0] sm:$0xff]  ;;  %v76_v13 = vld [vmem:[%s4165_s0 + $0xe8] sm:$0xff] }
  0x28   :  { %2834 = vmatprep.subr.bf16.mxu1 %v2833_v45  ;;  %v77_v14 = vld [vmem:[%s4165_s0 + $0xf0] sm:$0xff]  ;;  %v78_v15 = vld [vmem:[%s4165_s0 + $0xf8] sm:$0xff]  ;;  %v79_v16 = vld [vmem:[%s4165_s0 + $0x100] sm:$0xff] }
  0x29   :  { %v80_v17 = vld [vmem:[%s4165_s0 + $0x108] sm:$0xff]  ;;  %v81_v18 = vld [vmem:[%s4165_s0 + $0x110] sm:$0xff]  ;;  %v82_v19 = vld [vmem:[%s4165_s0 + $0x118] sm:$0xff] }
  0x2a   :  { %2595 = vmatmul.mubr.msk.f32.gmra.mrb[6].mxu0 %vm122_vm0, %v54_v22  ;;  %v83_v20 = vld [vmem:[%s4165_s0 + $0x120] sm:$0xff]  ;;  %v84_v21 = vld [vmem:[%s4165_s0 + $0x128] sm:$0xff]  ;;  %v85_v22 = vld [vmem:[%s4165_s0 + $0x130] sm:$0xff] }
  0x2b   :  { %2597 = vmatprep.mubr.msk.f32.mxu0 %vm122_vm0, %v55_v26  ;;  %2836 = vmatpush1.bf16.msra.mxu1 %v2835_v52  ;;  %v86_v23 = vld [vmem:[%s4165_s0 + $0x138] sm:$0xff]  ;;  %v87_v24 = vld [vmem:[%s4165_s0 + $0x140] sm:$0xff]  ;;  %v88_v25 = vld [vmem:[%s4165_s0 + $0x148] sm:$0xff] }
  0x2c   :  { %2838 = vmatprep.subr.bf16.mxu1 %v2837_v53  ;;  %v89_v26 = vld [vmem:[%s4165_s0 + $0x150] sm:$0xff]  ;;  %v90_v27 = vld [vmem:[%s4165_s0 + $0x158] sm:$0xff]  ;;  %v91_v28 = vld [vmem:[%s4165_s0 + $0x160] sm:$0xff] }
  0x2d   :  { %v793_v29 = vld [vmem:[%s4168_s3 + $0xe8] sm:$0xff]  ;;  %v795_v30 = vld [vmem:[%s4168_s3 + $0xf8] sm:$0xff]  ;;  %v792_v32 = vld [vmem:[%s4168_s3 + $0xe0] sm:$0xff] }
  0x2e   :  { %2598 = vmatmul.mubr.msk.f32.gmra.mrb[8].mxu0 %vm122_vm0, %v56_v34  ;;  %v2845_v31 = vpack.c.bf16 %v795_v30, %v793_v29  ;;  %v794_v33 = vld [vmem:[%s4168_s3 + $0xf0] sm:$0xff]  ;;  %v94_v38 = vld [vmem:[%s4165_s0 + $0x178] sm:$0xff]  ;;  %v95_v39 = vld [vmem:[%s4165_s0 + $0x180] sm:$0xff] }
  0x2f   :  { %2600 = vmatprep.mubr.msk.f32.mxu0 %vm122_vm0, %v57_v35  ;;  %2840 = vmatpush1.bf16.msra.mxu1 %v2839_v60  ;;  %v2847_v34 = vpack.c.bf16 %v794_v33, %v792_v32  ;;  %v92_v35 = vld [vmem:[%s4165_s0 + $0x168] sm:$0xff]  ;;  %v93_v36 = vld [vmem:[%s4165_s0 + $0x170] sm:$0xff]  ;;  %v102_v46 = vld [vmem:[%s4165_s0 + $0x1b8] sm:$0xff] }
  0x30   :  { %2842 = vmatprep.subr.bf16.mxu1 %v2841_v61  ;;  %v96_v40 = vld [vmem:[%s4165_s0 + $0x188] sm:$0xff]  ;;  %v97_v41 = vld [vmem:[%s4165_s0 + $0x190] sm:$0xff]  ;;  %v103_v47 = vld [vmem:[%s4165_s0 + $0x1c0] sm:$0xff] }
  0x31   :  { %v100_v44 = vld [vmem:[%s4165_s0 + $0x1a8] sm:$0xff]  ;;  %v101_v45 = vld [vmem:[%s4165_s0 + $0x1b0] sm:$0xff]  ;;  %v110_v54 = vld [vmem:[%s4165_s0 + $0x1f8] sm:$0xff] }
  0x32   :  { %2601 = vmatmul.mubr.msk.f32.gmra.mrb[10].mxu0 %vm122_vm0, %v58_v42  ;;  %v98_v42 = vld [vmem:[%s4165_s0 + $0x198] sm:$0xff]  ;;  %v104_v48 = vld [vmem:[%s4165_s0 + $0x1c8] sm:$0xff]  ;;  %v105_v49 = vld [vmem:[%s4165_s0 + $0x1d0] sm:$0xff] }
  0x33   :  { %2603 = vmatprep.mubr.msk.f32.mxu0 %vm122_vm0, %v59_v43  ;;  %2844 = vmatpush1.bf16.msra.mxu1 %v2843_v2  ;;  %v99_v43 = vld [vmem:[%s4165_s0 + $0x1a0] sm:$0xff]  ;;  %v108_v52 = vld [vmem:[%s4165_s0 + $0x1e8] sm:$0xff]  ;;  %v109_v53 = vld [vmem:[%s4165_s0 + $0x1f0] sm:$0xff] }
  0x34   :  { %2846 = vmatprep.subr.bf16.mxu1 %v2845_v31  ;;  %v1385_v55 = vld [vmem:[%s4170_s5] sm:$0xff]  ;;  %v1386_v56 = vld [vmem:[%s4170_s5 + $0x8] sm:$0xff]  ;;  %v1388_v60 = vld [vmem:[%s4170_s5 + $0x18] sm:$0xff] }
  0x35   :  { %v1389_v62 = vld [vmem:[%s4170_s5 + $0x20] sm:$0xff]  ;;  %v1390_v63 = vld [vmem:[%s4170_s5 + $0x28] sm:$0xff]  ;;  %v1392_v2 = vld [vmem:[%s4170_s5 + $0x38] sm:$0xff] }
  0x36   :  { %2604 = vmatmul.mubr.msk.f32.gmra.mrb[12].mxu0 %vm122_vm0, %v60_v50  ;;  %v106_v50 = vld [vmem:[%s4165_s0 + $0x1d8] sm:$0xff] }
  0x37   :  { %2606 = vmatprep.mubr.msk.f32.mxu0 %vm122_vm0, %v61_v51  ;;  %2848 = vmatpush1.bf16.msra.mxu1 %v2847_v34  ;;  %v107_v51 = vld [vmem:[%s4165_s0 + $0x1e0] sm:$0xff] }
  0x3a   :  { %2607 = vmatmul.mubr.msk.f32.gmra.mrb[14].mxu0 %vm122_vm0, %v62_v58  ;;  %v2850_v58 = vpack.c.bf16 %v1386_v56, %v1385_v55 }
  0x3b   :  { %2609 = vmatprep.mubr.msk.f32.mxu0 %vm122_vm0, %v63_v59  ;;  %v1387_v59 = vld [vmem:[%s4170_s5 + $0x10] sm:$0xff] }
  0x3c   :  { %2851 = vmatpush1.bf16.msra.mxu0 %v2850_v58  ;;  %v2853_v61 = vpack.c.bf16 %v1388_v60, %v1387_v59 }
  0x3d   :  { %2852 = vmatprep.subr.bf16.mxu0 %v3003_v57 }
  0x3e   :  { %2610 = vmatmul.mubr.msk.f32.gmra.mrb[16].mxu0 %vm122_vm0, %v64_v0  ;;  %v2856_v0 = vpack.c.bf16 %v1390_v63, %v1389_v62  ;;  %v1403_v62 = vld [vmem:[%s4170_s5 + $0x90] sm:$0xff]  ;;  %v1404_v63 = vld [vmem:[%s4170_s5 + $0x98] sm:$0xff] }
  0x3f   :  { %2612 = vmatprep.mubr.msk.f32.mxu0 %vm122_vm0, %v65_v1  ;;  %v1391_v1 = vld [vmem:[%s4170_s5 + $0x30] sm:$0xff] }
  0x40   :  { %2854 = vmatpush1.bf16.msra.mxu0 %v2853_v61 }
  0x41   :  { %2855 = vmatprep.subr.bf16.mxu0 %v3003_v57 }
  0x42   :  { %2613 = vmatmul.mubr.msk.f32.gmra.mrb[18].mxu0 %vm122_vm0, %v66_v3  ;;  %v2859_v3 = vpack.c.bf16 %v1392_v2, %v1391_v1 }
  0x43   :  { %2615 = vmatprep.mubr.msk.f32.mxu0 %vm122_vm0, %v67_v4  ;;  %v1393_v4 = vld [vmem:[%s4170_s5 + $0x40] sm:$0xff] }
  0x44   :  { %2857 = vmatpush1.bf16.msra.mxu0 %v2856_v0  ;;  %v2877_v0 = vpack.c.bf16 %v1404_v63, %v1403_v62 }
  0x45   :  { %2858 = vmatprep.subr.bf16.mxu0 %v3003_v57 }
  0x46   :  { %2616 = vmatmul.mubr.msk.f32.gmra.mrb[20].mxu0 %vm122_vm0, %v68_v5  ;;  %v1394_v5 = vld [vmem:[%s4170_s5 + $0x48] sm:$0xff] }
  0x47   :  { %2618 = vmatprep.mubr.msk.f32.mxu0 %vm122_vm0, %v69_v6  ;;  %v3461_v6 = vld [vmem:[%s4167_s2] ss:$0 sm:$0xff] }
  0x48   :  { %2860 = vmatpush1.bf16.msra.mxu0 %v2859_v3 }
  0x49   :  { %2861 = vmatprep.subr.bf16.mxu0 %v3003_v57 }
  0x4a   :  { %2619 = vmatmul.mubr.msk.f32.gmra.mrb[22].mxu0 %vm122_vm0, %v70_v7  ;;  %v2862_v7 = vpack.c.bf16 %v1394_v5, %v1393_v4 }
  0x4b   :  { %2621 = vmatprep.mubr.msk.f32.mxu0 %vm122_vm0, %v71_v8 }
  0x4c   :  { %2863 = vmatpush1.bf16.msra.mxu0 %v2862_v7 }
  0x4d   :  { %2864 = vmatprep.subr.bf16.mxu0 %v3003_v57 }
  0x4e   :  { %2622 = vmatmul.mubr.msk.f32.gmra.mrb[24].mxu0 %vm122_vm0, %v72_v9 }
  0x4f   :  { %2624 = vmatprep.mubr.msk.f32.mxu0 %vm122_vm0, %v73_v10 }
  0x52   :  { %2625 = vmatmul.mubr.msk.f32.gmra.mrb[26].mxu0 %vm122_vm0, %v74_v11 }
  0x53   :  { %2627 = vmatprep.mubr.msk.f32.mxu0 %vm122_vm0, %v75_v12 }
  0x56   :  { %2628 = vmatmul.mubr.msk.f32.gmra.mrb[28].mxu0 %vm122_vm0, %v76_v13 }
  0x57   :  { %2630 = vmatprep.mubr.msk.f32.mxu0 %vm122_vm0, %v77_v14 }
  0x5a   :  { %2631 = vmatmul.mubr.msk.f32.gmra.mrb[30].mxu0 %vm122_vm0, %v78_v15 }
  0x5b   :  { %2633 = vmatprep.mubr.msk.f32.mxu0 %vm122_vm0, %v79_v16  ;;  %v1395_v16 = vld [vmem:[%s4170_s5 + $0x50] sm:$0xff] }
  0x5e   :  { %2634 = vmatmul.mubr.msk.f32.gmra.mrb[32].mxu0 %vm122_vm0, %v80_v17  ;;  %v1396_v17 = vld [vmem:[%s4170_s5 + $0x58] sm:$0xff] }
  0x5f   :  { %2636 = vmatprep.mubr.msk.f32.mxu0 %vm122_vm0, %v81_v18  ;;  %v2865_v18 = vpack.c.bf16 %v1396_v17, %v1395_v16 }
  0x61   :  { %2866 = vmatpush1.bf16.msra.mxu0 %v2865_v18 }
  0x62   :  { %2637 = vmatmul.mubr.msk.f32.gmra.mrb[34].mxu0 %vm122_vm0, %v82_v19  ;;  %2867 = vmatprep.subr.bf16.mxu0 %v3003_v57 }
  0x63   :  { %2639 = vmatprep.mubr.msk.f32.mxu0 %vm122_vm0, %v83_v20 }
  0x66   :  { %2640 = vmatmul.mubr.msk.f32.gmra.mrb[36].mxu0 %vm122_vm0, %v84_v21 }
  0x67   :  { %2642 = vmatprep.mubr.msk.f32.mxu0 %vm122_vm0, %v85_v22 }
  0x6a   :  { %2643 = vmatmul.mubr.msk.f32.gmra.mrb[38].mxu0 %vm122_vm0, %v86_v23 }
  0x6b   :  { %2645 = vmatprep.mubr.msk.f32.mxu0 %vm122_vm0, %v87_v24 }
  0x6e   :  { %2646 = vmatmul.mubr.msk.f32.gmra.mrb[40].mxu0 %vm122_vm0, %v88_v25 }
  0x6f   :  { %2648 = vmatprep.mubr.msk.f32.mxu0 %vm122_vm0, %v89_v26 }
  0x72   :  { %2649 = vmatmul.mubr.msk.f32.gmra.mrb[42].mxu0 %vm122_vm0, %v90_v27  ;;  %v1397_v27 = vld [vmem:[%s4170_s5 + $0x60] sm:$0xff] }
  0x73   :  { %2651 = vmatprep.mubr.msk.f32.mxu0 %vm122_vm0, %v91_v28  ;;  %v1398_v28 = vld [vmem:[%s4170_s5 + $0x68] sm:$0xff] }
  0x74   :  { %v2868_v29 = vpack.c.bf16 %v1398_v28, %v1397_v27 }
  0x76   :  { %2652 = vmatmul.mubr.msk.f32.gmra.mrb[44].mxu0 %vm122_vm0, %v92_v35 }
  0x77   :  { %2654 = vmatprep.mubr.msk.f32.mxu0 %vm122_vm0, %v93_v36  ;;  %2869 = vmatpush1.bf16.msra.mxu0 %v2868_v29 }
  0x78   :  { %2870 = vmatprep.subr.bf16.mxu0 %v3003_v57 }
  0x7a   :  { %2655 = vmatmul.mubr.msk.f32.gmra.mrb[46].mxu0 %vm122_vm0, %v94_v38 }
  0x7b   :  { %2657 = vmatprep.mubr.msk.f32.mxu0 %vm122_vm0, %v95_v39  ;;  %v1399_v39 = vld [vmem:[%s4170_s5 + $0x70] sm:$0xff] }
  0x7e   :  { %2658 = vmatmul.mubr.msk.f32.gmra.mrb[48].mxu0 %vm122_vm0, %v96_v40  ;;  %v1400_v40 = vld [vmem:[%s4170_s5 + $0x78] sm:$0xff] }
  0x7f   :  { %2660 = vmatprep.mubr.msk.f32.mxu0 %vm122_vm0, %v97_v41  ;;  %v2871_v41 = vpack.c.bf16 %v1400_v40, %v1399_v39 }
  0x81   :  { %2872 = vmatpush1.bf16.msra.mxu0 %v2871_v41 }
  0x82   :  { %2661 = vmatmul.mubr.msk.f32.gmra.mrb[50].mxu0 %vm122_vm0, %v98_v42  ;;  %2873 = vmatprep.subr.bf16.mxu0 %v3003_v57 }
  0x83   :  { %2663 = vmatprep.mubr.msk.f32.mxu0 %vm122_vm0, %v99_v43 }
  0x86   :  { %2664 = vmatmul.mubr.msk.f32.gmra.mrb[52].mxu0 %vm122_vm0, %v100_v44 }
  0x87   :  { %2666 = vmatprep.mubr.msk.f32.mxu0 %vm122_vm0, %v101_v45 }
  0x8a   :  { %2667 = vmatmul.mubr.msk.f32.gmra.mrb[54].mxu0 %vm122_vm0, %v102_v46 }
  0x8b   :  { %2669 = vmatprep.mubr.msk.f32.mxu0 %vm122_vm0, %v103_v47 }
  0x8e   :  { %2670 = vmatmul.mubr.msk.f32.gmra.mrb[56].mxu0 %vm122_vm0, %v104_v48 }
  0x8f   :  { %2672 = vmatprep.mubr.msk.f32.mxu0 %vm122_vm0, %v105_v49 }
  0x92   :  { %2673 = vmatmul.mubr.msk.f32.gmra.mrb[58].mxu0 %vm122_vm0, %v106_v50  ;;  %v1401_v50 = vld [vmem:[%s4170_s5 + $0x80] sm:$0xff] }
  0x93   :  { %2675 = vmatprep.mubr.msk.f32.mxu0 %vm122_vm0, %v107_v51  ;;  %v1402_v51 = vld [vmem:[%s4170_s5 + $0x88] sm:$0xff] }
  0x96   :  { %2676 = vmatmul.mubr.msk.f32.gmra.mrb[60].mxu0 %vm122_vm0, %v108_v52  ;;  %v2874_v52 = vpack.c.bf16 %v1402_v51, %v1401_v50 }
  0x97   :  { %2678 = vmatprep.mubr.msk.f32.mxu0 %vm122_vm0, %v109_v53 }
  0x98   :  { %2875 = vmatpush1.bf16.msra.mxu0 %v2874_v52 }
  0x99   :  { %2876 = vmatprep.subr.bf16.mxu0 %v3003_v57 }
  0x9a   :  { %2679 = vmatmul.mubr.msk.f32.gmra.mrb[62].mxu0 %vm122_vm0, %v110_v54 }
  0x9c   :  { %2878 = vmatpush1.bf16.msra.mxu0 %v2877_v0 }
  0x9d   :  { %2879 = vmatprep.subr.bf16.mxu0 %v3003_v57 }
  0xf1   :  { %v2587_v8 = vpop.f32.mrb[0].mxu0 }
  0xf2   :  { %v381_v9 = vpop.f32.mrb[1].mxu0  ;;  %v387_v11 = vadd.f32 %v2587_v8, %v3461_v6 }
  0xf3   :  { %v382_v10 = vadd.f32 %v3461_v6, %v381_v9 }
  0xf4   :  { %v701_v19 = vmax.f32 %v387_v11, 0.0  ;;  %v1406_v11 = vld [vmem:[%s4170_s5 + $0xa8] sm:$0xff] }
  0xf5   :  { %v700_v12 = vmax.f32 %v382_v10, 0.0  ;;  %v2590_v13 = vpop.f32.mrb[2].mxu0  ;;  %v1405_v10 = vld [vmem:[%s4170_s5 + $0xa0] sm:$0xff] }
  0xf6   :  { %v391_v14 = vpop.f32.mrb[3].mxu0  ;;  %v397_v23 = vadd.f32 %v2590_v13, %v3461_v6 }
  0xf7   :  { %873 = vmatmul.mubr.f32.vlgmr.msra.gmra.mrb[0].mxu1 %v700_v12  ;;  %v392_v15 = vadd.f32 %v3461_v6, %v391_v14  ;;  %v2880_v12 = vpack.c.bf16 %v1406_v11, %v1405_v10 }
  0xf8   :  { %878 = vmatprep.mubr.f32.mxu1 %v3002_v37  ;;  %v703_v30 = vmax.f32 %v397_v23, 0.0 }
  0xf9   :  { %v2593_v20 = vpop.f32.mrb[4].mxu0  ;;  %v702_v22 = vmax.f32 %v392_v15, 0.0  ;;  %2881 = vmatpush1.bf16.msra.mxu0 %v2880_v12 }
  0xfa   :  { %v401_v21 = vpop.f32.mrb[5].mxu0  ;;  %v407_v34 = vadd.f32 %v2593_v20, %v3461_v6  ;;  %2882 = vmatprep.subr.bf16.mxu0 %v3003_v57 }
  0xfb   :  { %879 = vmatmul.mubr.f32.gmra.mrb[2].mxu1 %v701_v19  ;;  %v402_v26 = vadd.f32 %v3461_v6, %v401_v21  ;;  %v1407_v21 = vld [vmem:[%s4170_s5 + $0xb0] sm:$0xff] }
  0xfc   :  { %884 = vmatprep.mubr.f32.mxu1 %v3002_v37  ;;  %v705_v42 = vmax.f32 %v407_v34, 0.0 }
  0xfd   :  { %v2596_v24 = vpop.f32.mrb[6].mxu0  ;;  %v704_v33 = vmax.f32 %v402_v26, 0.0 }
  0xfe   :  { %v411_v25 = vpop.f32.mrb[7].mxu0  ;;  %v417_v46 = vadd.f32 %v2596_v24, %v3461_v6 }
  0xff   :  { %885 = vmatmul.mubr.f32.gmra.mrb[4].mxu1 %v702_v22  ;;  %v412_v38 = vadd.f32 %v3461_v6, %v411_v25  ;;  %v1408_v22 = vld [vmem:[%s4170_s5 + $0xb8] sm:$0xff] }
 0x100   :  { %890 = vmatprep.mubr.f32.mxu1 %v3002_v37  ;;  %v707_v53 = vmax.f32 %v417_v46, 0.0  ;;  %v2883_v23 = vpack.c.bf16 %v1408_v22, %v1407_v21 }
 0x101   :  { %v2599_v31 = vpop.f32.mrb[8].mxu0  ;;  %v706_v45 = vmax.f32 %v412_v38, 0.0 }
 0x102   :  { %v421_v32 = vpop.f32.mrb[9].mxu0  ;;  %v427_v58 = vadd.f32 %v2599_v31, %v3461_v6  ;;  %2884 = vmatpush1.bf16.msra.mxu0 %v2883_v23 }
 0x103   :  { %891 = vmatmul.mubr.f32.gmra.mrb[6].mxu1 %v703_v30  ;;  %v422_v49 = vadd.f32 %v3461_v6, %v421_v32  ;;  %2885 = vmatprep.subr.bf16.mxu0 %v3003_v57  ;;  %v1409_v32 = vld [vmem:[%s4170_s5 + $0xc0] sm:$0xff] }
 0x104   :  { %896 = vmatprep.mubr.f32.mxu1 %v3002_v37  ;;  %v709_v1 = vmax.f32 %v427_v58, 0.0 }
 0x105   :  { %v2602_v35 = vpop.f32.mrb[10].mxu0  ;;  %v708_v56 = vmax.f32 %v422_v49, 0.0 }
 0x106   :  { %v431_v36 = vpop.f32.mrb[11].mxu0  ;;  %v437_v5 = vadd.f32 %v2602_v35, %v3461_v6 }
 0x107   :  { %897 = vmatmul.mubr.f32.gmra.mrb[8].mxu1 %v704_v33  ;;  %v432_v61 = vadd.f32 %v3461_v6, %v431_v36  ;;  %v1410_v33 = vld [vmem:[%s4170_s5 + $0xc8] sm:$0xff] }
 0x108   :  { %902 = vmatprep.mubr.f32.mxu1 %v3002_v37  ;;  %v711_v13 = vmax.f32 %v437_v5, 0.0  ;;  %v2886_v34 = vpack.c.bf16 %v1410_v33, %v1409_v32 }
 0x109   :  { %v2605_v43 = vpop.f32.mrb[12].mxu0  ;;  %v710_v4 = vmax.f32 %v432_v61, 0.0 }
 0x10a   :  { %v441_v44 = vpop.f32.mrb[13].mxu0  ;;  %v447_v17 = vadd.f32 %v2605_v43, %v3461_v6  ;;  %2887 = vmatpush1.bf16.msra.mxu0 %v2886_v34 }
 0x10b   :  { %903 = vmatmul.mubr.f32.gmra.mrb[10].mxu1 %v705_v42  ;;  %v442_v9 = vadd.f32 %v3461_v6, %v441_v44  ;;  %2888 = vmatprep.subr.bf16.mxu0 %v3003_v57  ;;  %v1411_v44 = vld [vmem:[%s4170_s5 + $0xd0] sm:$0xff] }
 0x10c   :  { %908 = vmatprep.mubr.f32.mxu1 %v3002_v37  ;;  %v713_v24 = vmax.f32 %v447_v17, 0.0 }
 0x10d   :  { %v3499_v47 = vpop.f32.mrb[14].mxu0  ;;  %v712_v16 = vmax.f32 %v442_v9, 0.0 }
 0x10e   :  { %v451_v48 = vpop.f32.mrb[15].mxu0  ;;  %v457_v28 = vadd.f32 %v3499_v47, %v3461_v6 }
 0x10f   :  { %909 = vmatmul.mubr.f32.gmra.mrb[12].mxu1 %v706_v45  ;;  %v452_v20 = vadd.f32 %v3461_v6, %v451_v48  ;;  %v1412_v45 = vld [vmem:[%s4170_s5 + $0xd8] sm:$0xff] }
 0x110   :  { %914 = vmatprep.mubr.f32.mxu1 %v3002_v37  ;;  %v715_v35 = vmax.f32 %v457_v28, 0.0  ;;  %v2889_v46 = vpack.c.bf16 %v1412_v45, %v1411_v44 }
 0x111   :  { %v3509_v54 = vpop.f32.mrb[16].mxu0  ;;  %v714_v27 = vmax.f32 %v452_v20, 0.0 }
 0x112   :  { %v461_v55 = vpop.f32.mrb[17].mxu0  ;;  %v467_v40 = vadd.f32 %v3509_v54, %v3461_v6  ;;  %2890 = vmatpush1.bf16.msra.mxu0 %v2889_v46 }
 0x113   :  { %915 = vmatmul.mubr.f32.gmra.mrb[14].mxu1 %v707_v53  ;;  %v462_v31 = vadd.f32 %v3461_v6, %v461_v55  ;;  %2891 = vmatprep.subr.bf16.mxu0 %v3003_v57  ;;  %v1413_v55 = vld [vmem:[%s4170_s5 + $0xe0] sm:$0xff] }
 0x114   :  { %920 = vmatprep.mubr.f32.mxu1 %v3002_v37  ;;  %v717_v47 = vmax.f32 %v467_v40, 0.0 }
 0x115   :  { %v3514_v59 = vpop.f32.mrb[18].mxu0  ;;  %v716_v39 = vmax.f32 %v462_v31, 0.0 }
 0x116   :  { %v3516_v60 = vpop.f32.mrb[19].mxu0  ;;  %v477_v51 = vadd.f32 %v3514_v59, %v3461_v6 }
 0x117   :  { %921 = vmatmul.mubr.f32.gmra.mrb[16].mxu1 %v708_v56  ;;  %v472_v43 = vadd.f32 %v3461_v6, %v3516_v60  ;;  %v1414_v56 = vld [vmem:[%s4170_s5 + $0xe8] sm:$0xff] }
 0x118   :  { %926 = vmatprep.mubr.f32.mxu1 %v3002_v37  ;;  %v2892_v58 = vpack.c.bf16 %v1414_v56, %v1413_v55  ;;  %v719_v59 = vmax.f32 %v477_v51, 0.0 }
 0x119   :  { %v3526_v2 = vpop.f32.mrb[20].mxu0  ;;  %v718_v50 = vmax.f32 %v472_v43, 0.0 }
 0x11a   :  { %v3528_v3 = vpop.f32.mrb[21].mxu0  ;;  %2893 = vmatpush1.bf16.msra.mxu0 %v2892_v58  ;;  %v487_v63 = vadd.f32 %v3526_v2, %v3461_v6 }
 0x11b   :  { %927 = vmatmul.mubr.f32.gmra.mrb[18].mxu1 %v709_v1  ;;  %v482_v54 = vadd.f32 %v3461_v6, %v3528_v3  ;;  %2894 = vmatprep.subr.bf16.mxu0 %v3003_v57  ;;  %v1416_v57 = vld [vmem:[%s4170_s5 + $0xf8] sm:$0xff] }
 0x11c   :  { %932 = vmatprep.mubr.f32.mxu1 %v3002_v37  ;;  %v721_v2 = vmax.f32 %v487_v63, 0.0 }
 0x11d   :  { %v3533_v7 = vpop.f32.mrb[22].mxu0  ;;  %v720_v62 = vmax.f32 %v482_v54, 0.0 }
 0x11e   :  { %v3535_v8 = vpop.f32.mrb[23].mxu0 }
 0x11f   :  { %933 = vmatmul.mubr.f32.gmra.mrb[20].mxu1 %v710_v4  ;;  %v492_v3 = vadd.f32 %v3461_v6, %v3535_v8  ;;  %v1415_v4 = vld [vmem:[%s4170_s5 + $0xf0] sm:$0xff]  ;;  %v497_v8 = vadd.f32 %v3533_v7, %v3461_v6 }
 0x120   :  { %938 = vmatprep.mubr.f32.mxu1 %v3002_v37  ;;  %v2895_v5 = vpack.c.bf16 %v1416_v57, %v1415_v4 }
 0x121   :  { %v3545_v14 = vpop.f32.mrb[24].mxu0  ;;  %v722_v11 = vmax.f32 %v492_v3, 0.0  ;;  %v723_v17 = vmax.f32 %v497_v8, 0.0 }
 0x122   :  { %v3547_v15 = vpop.f32.mrb[25].mxu0  ;;  %2896 = vmatpush1.bf16.msra.mxu0 %v2895_v5  ;;  %v507_v7 = vadd.f32 %v3545_v14, %v3461_v6 }
 0x123   :  { %939 = vmatmul.mubr.f32.gmra.mrb[22].mxu1 %v711_v13 }
 0x124   :  { %944 = vmatprep.mubr.f32.mxu1 %v3002_v37 }
 0x125   :  { %v3552_v18 = vpop.f32.mrb[26].mxu0 }
 0x126   :  { %v3554_v19 = vpop.f32.mrb[27].mxu0  ;;  %v517_v14 = vadd.f32 %v3552_v18, %v3461_v6 }
 0x127   :  { %945 = vmatmul.mubr.f32.gmra.mrb[24].mxu1 %v712_v16  ;;  %v502_v16 = vadd.f32 %v3461_v6, %v3547_v15  ;;  %v512_v15 = vadd.f32 %v3461_v6, %v3554_v19 }
 0x128   :  { %950 = vmatprep.mubr.f32.mxu1 %v3002_v37 }
 0x129   :  { %v3564_v25 = vpop.f32.mrb[28].mxu0  ;;  %v724_v22 = vmax.f32 %v502_v16, 0.0  ;;  %v726_v32 = vmax.f32 %v512_v15, 0.0 }
 0x12a   :  { %v3566_v26 = vpop.f32.mrb[29].mxu0  ;;  %v527_v18 = vadd.f32 %v3564_v25, %v3461_v6 }
 0x12b   :  { %951 = vmatmul.mubr.f32.gmra.mrb[26].mxu1 %v713_v24  ;;  %v522_v19 = vadd.f32 %v3461_v6, %v3566_v26 }
 0x12c   :  { %956 = vmatprep.mubr.f32.mxu1 %v3002_v37  ;;  %v729_v46 = vmax.f32 %v527_v18, 0.0 }
 0x12d   :  { %v3572_v29 = vpop.f32.mrb[30].mxu0  ;;  %v728_v43 = vmax.f32 %v522_v19, 0.0 }
 0x12e   :  { %v3574_v30 = vpop.f32.mrb[31].mxu0  ;;  %v537_v25 = vadd.f32 %v3572_v29, %v3461_v6 }
 0x12f   :  { %957 = vmatmul.mubr.f32.gmra.mrb[28].mxu1 %v714_v27  ;;  %v725_v27 = vmax.f32 %v507_v7, 0.0  ;;  %v532_v26 = vadd.f32 %v3461_v6, %v3574_v30 }
 0x130   :  { %962 = vmatprep.mubr.f32.mxu1 %v3002_v37  ;;  %v731_v56 = vmax.f32 %v537_v25, 0.0 }
 0x131   :  { %v3584_v36 = vpop.f32.mrb[32].mxu0  ;;  %v730_v51 = vmax.f32 %v532_v26, 0.0 }
 0x132   :  { %v3586_v38 = vpop.f32.mrb[33].mxu0 }
 0x133   :  { %963 = vmatmul.mubr.f32.gmra.mrb[30].mxu1 %v715_v35  ;;  %v727_v35 = vmax.f32 %v517_v14, 0.0  ;;  %v542_v30 = vadd.f32 %v3461_v6, %v3586_v38  ;;  %v1873_v14 = vld [vmem:[%s4172_s7] sm:$0xff] }
 0x134   :  { %968 = vmatprep.mubr.f32.mxu1 %v3002_v37 }
 0x135   :  { %v3592_v41 = vpop.f32.mrb[34].mxu0  ;;  %v732_v58 = vmax.f32 %v542_v30, 0.0  ;;  %v796_v30 = vld [vmem:[%s4169_s4] sm:$0x3] }
 0x136   :  { %v3594_v42 = vpop.f32.mrb[35].mxu0  ;;  %v557_v38 = vadd.f32 %v3592_v41, %v3461_v6 }
 0x137   :  { %969 = vmatmul.mubr.f32.gmra.mrb[32].mxu1 %v716_v39  ;;  %v552_v29 = vadd.f32 %v3461_v6, %v3594_v42 }
 0x138   :  { %974 = vmatprep.mubr.f32.mxu1 %v3002_v37 }
 0x139   :  { %v3605_v48 = vpop.f32.mrb[36].mxu0  ;;  %v734_v63 = vmax.f32 %v552_v29, 0.0 }
 0x13a   :  { %v3607_v49 = vpop.f32.mrb[37].mxu0  ;;  %v567_v42 = vadd.f32 %v3605_v48, %v3461_v6 }
 0x13b   :  { %975 = vmatmul.mubr.f32.gmra.mrb[34].mxu1 %v717_v47  ;;  %v562_v3 = vadd.f32 %v3461_v6, %v3607_v49 }
 0x13c   :  { %980 = vmatprep.mubr.f32.mxu1 %v3002_v37  ;;  %v737_v41 = vmax.f32 %v567_v42, 0.0 }
 0x13d   :  { %v3613_v52 = vpop.f32.mrb[38].mxu0  ;;  %v736_v4 = vmax.f32 %v562_v3, 0.0 }
 0x13e   :  { %v3615_v53 = vpop.f32.mrb[39].mxu0  ;;  %v577_v49 = vadd.f32 %v3613_v52, %v3461_v6 }
 0x13f   :  { %981 = vmatmul.mubr.f32.gmra.mrb[36].mxu1 %v718_v50  ;;  %v572_v57 = vadd.f32 %v3461_v6, %v3615_v53 }
 0x140   :  { %986 = vmatprep.mubr.f32.mxu1 %v3002_v37  ;;  %v739_v48 = vmax.f32 %v577_v49, 0.0 }
 0x141   :  { %v3626_v60 = vpop.f32.mrb[40].mxu0  ;;  %v738_v5 = vmax.f32 %v572_v57, 0.0 }
 0x142   :  { %v3628_v61 = vpop.f32.mrb[41].mxu0  ;;  %v587_v53 = vadd.f32 %v3626_v60, %v3461_v6 }
 0x143   :  { %987 = vmatmul.mubr.f32.gmra.mrb[38].mxu1 %v719_v59  ;;  %v547_v59 = vadd.f32 %v3584_v36, %v3461_v6  ;;  %v735_v36 = vmax.f32 %v557_v38, 0.0 }
 0x144   :  { %992 = vmatprep.mubr.f32.mxu1 %v3002_v37  ;;  %v741_v52 = vmax.f32 %v587_v53, 0.0 }
 0x145   :  { %v3634_v0 = vpop.f32.mrb[42].mxu0 }
 0x146   :  { %v3636_v1 = vpop.f32.mrb[43].mxu0 }
 0x147   :  { %993 = vmatmul.mubr.f32.gmra.mrb[40].mxu1 %v720_v62  ;;  %v733_v62 = vmax.f32 %v547_v59, 0.0  ;;  %v592_v8 = vadd.f32 %v3461_v6, %v3636_v1 }
 0x148   :  { %998 = vmatprep.mubr.f32.mxu1 %v3002_v37 }
 0x149   :  { %v3647_v9 = vpop.f32.mrb[44].mxu0  ;;  %v742_v16 = vmax.f32 %v592_v8, 0.0 }
 0x14a   :  { %v3649_v10 = vpop.f32.mrb[45].mxu0  ;;  %v607_v1 = vadd.f32 %v3647_v9, %v3461_v6 }
 0x14b   :  { %999 = vmatmul.mubr.f32.gmra.mrb[42].mxu1 %v721_v2  ;;  %v582_v2 = vadd.f32 %v3461_v6, %v3628_v61  ;;  %v597_v61 = vadd.f32 %v3634_v0, %v3461_v6 }
 0x14c   :  { %1004 = vmatprep.mubr.f32.mxu1 %v3002_v37  ;;  %v745_v0 = vmax.f32 %v607_v1, 0.0 }
 0x14d   :  { %v3654_v12 = vpop.f32.mrb[46].mxu0  ;;  %v743_v60 = vmax.f32 %v597_v61, 0.0 }
 0x14e   :  { %v3656_v13 = vpop.f32.mrb[47].mxu0 }
 0x14f   :  { %1005 = vmatmul.mubr.f32.gmra.mrb[44].mxu1 %v722_v11  ;;  %v740_v11 = vmax.f32 %v582_v2, 0.0  ;;  %v612_v7 = vadd.f32 %v3461_v6, %v3656_v13 }
 0x150   :  { %1010 = vmatprep.mubr.f32.mxu1 %v3002_v37 }
 0x151   :  { %v3661_v20 = vpop.f32.mrb[48].mxu0  ;;  %v746_v15 = vmax.f32 %v612_v7, 0.0 }
 0x152   :  { %v3663_v21 = vpop.f32.mrb[49].mxu0  ;;  %v627_v13 = vadd.f32 %v3661_v20, %v3461_v6 }
 0x153   :  { %1011 = vmatmul.mubr.f32.gmra.mrb[46].mxu1 %v723_v17  ;;  %v602_v17 = vadd.f32 %v3461_v6, %v3649_v10  ;;  %v617_v10 = vadd.f32 %v3654_v12, %v3461_v6  ;;  %v1874_v12 = vld [vmem:[%s4172_s7 + $0x8] sm:$0xff] }
 0x154   :  { %1016 = vmatprep.mubr.f32.mxu1 %v3002_v37  ;;  %v2897_v19 = vpack.c.bf16 %v1874_v12, %v1873_v14 }
 0x155   :  { %v3668_v23 = vpop.f32.mrb[50].mxu0  ;;  %v747_v9 = vmax.f32 %v617_v10, 0.0 }
 0x156   :  { %v3670_v24 = vpop.f32.mrb[51].mxu0  ;;  %2929 = vmatprep.subr.bf16.mxu1 %v2897_v19  ;;  %2898 = vmatprep.subr.bf16.mxu0 %v2897_v19  ;;  %v637_v18 = vadd.f32 %v3668_v23, %v3461_v6 }
 0x157   :  { %1017 = vmatmul.mubr.f32.gmra.mrb[48].mxu1 %v724_v22  ;;  %v744_v22 = vmax.f32 %v602_v17, 0.0 }
 0x158   :  { %1022 = vmatprep.mubr.f32.mxu1 %v3002_v37  ;;  %2937 = vmatpush3.bf16.msra.mxu1 %v2897_v19 }
 0x159   :  { %v3675_v28 = vpop.f32.mrb[52].mxu0 }
 0x15a   :  { %v3677_v31 = vpop.f32.mrb[53].mxu0  ;;  %v647_v23 = vadd.f32 %v3675_v28, %v3461_v6 }
 0x15b   :  { %1023 = vmatmul.mubr.f32.gmra.mrb[50].mxu1 %v725_v27  ;;  %v622_v27 = vadd.f32 %v3461_v6, %v3663_v21  ;;  %v632_v21 = vadd.f32 %v3461_v6, %v3670_v24  ;;  %v642_v26 = vadd.f32 %v3461_v6, %v3677_v31 }
 0x15c   :  { %1028 = vmatprep.mubr.f32.mxu1 %v3002_v37  ;;  %v753_v29 = vmax.f32 %v647_v23, 0.0 }
 0x15d   :  { %v3682_v33 = vpop.f32.mrb[54].mxu0  ;;  %v750_v20 = vmax.f32 %v632_v21, 0.0 }
 0x15e   :  { %v3684_v34 = vpop.f32.mrb[55].mxu0  ;;  %v657_v28 = vadd.f32 %v3682_v33, %v3461_v6 }
 0x15f   :  { %1029 = vmatmul.mubr.f32.gmra.mrb[52].mxu1 %v726_v32  ;;  %v748_v32 = vmax.f32 %v622_v27, 0.0  ;;  %v652_v31 = vadd.f32 %v3461_v6, %v3684_v34 }
 0x160   :  { %1034 = vmatprep.mubr.f32.mxu1 %v3002_v37  ;;  %v755_v2 = vmax.f32 %v657_v28, 0.0 }
 0x161   :  { %v3689_v39 = vpop.f32.mrb[56].mxu0 }
 0x162   :  { %v3691_v40 = vpop.f32.mrb[57].mxu0 }
 0x163   :  { %1035 = vmatmul.mubr.f32.gmra.mrb[54].mxu1 %v727_v35  ;;  %v749_v35 = vmax.f32 %v627_v13, 0.0 }
 0x164   :  { %1040 = vmatprep.mubr.f32.mxu1 %v3002_v37 }
 0x165   :  { %v3696_v44 = vpop.f32.mrb[58].mxu0 }
 0x166   :  { %v3698_v45 = vpop.f32.mrb[59].mxu0 }
 0x167   :  { %1041 = vmatmul.mubr.f32.gmra.mrb[56].mxu1 %v728_v43  ;;  %v798_v43 = vlaneseq }
 0x168   :  { %1046 = vmatprep.mubr.f32.mxu1 %v3002_v37 }
 0x169   :  { %v3703_v47 = vpop.f32.mrb[60].mxu0  ;;  %v799_v24 = vshrl.u32 %v798_v43, 7 }
 0x16a   :  { %v3705_v50 = vpop.f32.mrb[61].mxu0 }
 0x16b   :  { %1047 = vmatmul.mubr.f32.gmra.mrb[58].mxu1 %v729_v46  ;;  %v751_v46 = vmax.f32 %v637_v18, 0.0  ;;  %v800_v25 = vsub.s32 0, %v799_v24 }
 0x16c   :  { %1052 = vmatprep.mubr.f32.mxu1 %v3002_v37 }
 0x16d   :  { %v3710_v54 = vpop.f32.mrb[62].mxu0 }
 0x16e   :  { %v3712_v55 = vpop.f32.mrb[63].mxu0 }
 0x16f   :  { %1053 = vmatmul.mubr.f32.gmra.mrb[60].mxu1 %v730_v51  ;;  %v752_v51 = vmax.f32 %v642_v26, 0.0  ;;  %v692_v28 = vadd.f32 %v3461_v6, %v3712_v55  ;;  %v697_v55 = vadd.f32 %v3710_v54, %v3461_v6 }
 0x170   :  { %1058 = vmatprep.mubr.f32.mxu1 %v3002_v37 }
 0x173   :  { %1059 = vmatmul.mubr.f32.gmra.mrb[62].mxu1 %v731_v56  ;;  %v804_v56 = vsub.s32 1, %v799_v24  ;;  %v682_v24 = vadd.f32 %v3461_v6, %v3705_v50  ;;  %v687_v50 = vadd.f32 %v3703_v47, %v3461_v6 }
 0x174   :  { %1064 = vmatprep.mubr.f32.mxu1 %v3002_v37 }
 0x175   :  { %v3794_v59 = vrot.slane %v796_v30, %v804_v56  ;;  %v760_v56 = vmax.f32 %v682_v24, 0.0 }
 0x177   :  { %1065 = vmatmul.mubr.f32.gmra.mrb[64].mxu1 %v732_v58  ;;  %v3791_v58 = vrot.slane %v796_v30, %v800_v25 }
 0x178   :  { %1070 = vmatprep.mubr.f32.mxu1 %v3002_v37 }
 0x17b   :  { %1071 = vmatmul.mubr.f32.gmra.mrb[66].mxu1 %v733_v62 }
 0x17c   :  { %1076 = vmatprep.mubr.f32.mxu1 %v3002_v37 }
 0x17f   :  { %1077 = vmatmul.mubr.f32.gmra.mrb[68].mxu1 %v734_v63  ;;  %v754_v63 = vmax.f32 %v652_v31, 0.0 }
 0x180   :  { %1082 = vmatprep.mubr.f32.mxu1 %v3002_v37 }
 0x183   :  { %1083 = vmatmul.mubr.f32.gmra.mrb[70].mxu1 %v735_v36 }
 0x184   :  { %1088 = vmatprep.mubr.f32.mxu1 %v3002_v37 }
 0x187   :  { %1089 = vmatmul.mubr.f32.gmra.mrb[72].mxu1 %v736_v4 }
 0x188   :  { %1094 = vmatprep.mubr.f32.mxu1 %v3002_v37 }
 0x18b   :  { %1095 = vmatmul.mubr.f32.gmra.mrb[74].mxu1 %v737_v41 }
 0x18c   :  { %1100 = vmatprep.mubr.f32.mxu1 %v3002_v37 }
 0x18f   :  { %1101 = vmatmul.mubr.f32.gmra.mrb[76].mxu1 %v738_v5  ;;  %v662_v5 = vadd.f32 %v3461_v6, %v3691_v40  ;;  %v667_v40 = vadd.f32 %v3689_v39, %v3461_v6 }
 0x190   :  { %1106 = vmatprep.mubr.f32.mxu1 %v3002_v37 }
 0x191   :  { %v756_v53 = vmax.f32 %v662_v5, 0.0  ;;  %v757_v27 = vmax.f32 %v667_v40, 0.0 }
 0x193   :  { %1107 = vmatmul.mubr.f32.gmra.mrb[78].mxu1 %v739_v48 }
 0x194   :  { %1112 = vmatprep.mubr.f32.mxu1 %v3002_v37 }
 0x197   :  { %1113 = vmatmul.mubr.f32.gmra.mrb[80].mxu1 %v740_v11 }
 0x198   :  { %1118 = vmatprep.mubr.f32.mxu1 %v3002_v37 }
 0x19b   :  { %1119 = vmatmul.mubr.f32.gmra.mrb[82].mxu1 %v741_v52 }
 0x19c   :  { %1124 = vmatprep.mubr.f32.mxu1 %v3002_v37 }
 0x19f   :  { %1125 = vmatmul.mubr.f32.gmra.mrb[84].mxu1 %v742_v16 }
 0x1a0   :  { %1130 = vmatprep.mubr.f32.mxu1 %v3002_v37 }
 0x1a3   :  { %1131 = vmatmul.mubr.f32.gmra.mrb[86].mxu1 %v743_v60  ;;  %v1875_v60 = vld [vmem:[%s4172_s7 + $0x10] sm:$0xff] }
 0x1a4   :  { %1136 = vmatprep.mubr.f32.mxu1 %v3002_v37 }
 0x1a7   :  { %1137 = vmatmul.mubr.f32.gmra.mrb[88].mxu1 %v744_v22  ;;  %v1876_v22 = vld [vmem:[%s4172_s7 + $0x18] sm:$0xff] }
 0x1a8   :  { %1142 = vmatprep.mubr.f32.mxu1 %v3002_v37  ;;  %v2901_v39 = vpack.c.bf16 %v1876_v22, %v1875_v60 }
 0x1aa   :  { %2930 = vmatprep.subr.bf16.mxu1 %v2901_v39 }
 0x1ab   :  { %1143 = vmatmul.mubr.f32.gmra.mrb[90].mxu1 %v745_v0 }
 0x1ac   :  { %1148 = vmatprep.mubr.f32.mxu1 %v3002_v37  ;;  %2938 = vmatpush3.bf16.msra.mxu1 %v2901_v39 }
 0x1af   :  { %1149 = vmatmul.mubr.f32.gmra.mrb[92].mxu1 %v746_v15  ;;  %v672_v15 = vadd.f32 %v3461_v6, %v3698_v45 }
 0x1b0   :  { %1154 = vmatprep.mubr.f32.mxu1 %v3002_v37 }
 0x1b1   :  { %v758_v14 = vmax.f32 %v672_v15, 0.0 }
 0x1b3   :  { %1155 = vmatmul.mubr.f32.gmra.mrb[94].mxu1 %v747_v9 }
 0x1b4   :  { %1160 = vmatprep.mubr.f32.mxu1 %v3002_v37 }
 0x1b7   :  { %1161 = vmatmul.mubr.f32.gmra.mrb[96].mxu1 %v748_v32 }
 0x1b8   :  { %1166 = vmatprep.mubr.f32.mxu1 %v3002_v37 }
 0x1bb   :  { %1167 = vmatmul.mubr.f32.gmra.mrb[98].mxu1 %v749_v35 }
 0x1bc   :  { %1172 = vmatprep.mubr.f32.mxu1 %v3002_v37 }
 0x1bf   :  { %1173 = vmatmul.mubr.f32.gmra.mrb[100].mxu1 %v750_v20 }
 0x1c0   :  { %1178 = vmatprep.mubr.f32.mxu1 %v3002_v37 }
 0x1c3   :  { %1179 = vmatmul.mubr.f32.gmra.mrb[102].mxu1 %v751_v46 }
 0x1c4   :  { %1184 = vmatprep.mubr.f32.mxu1 %v3002_v37 }
 0x1c7   :  { %1185 = vmatmul.mubr.f32.gmra.mrb[104].mxu1 %v752_v51 }
 0x1c8   :  { %1190 = vmatprep.mubr.f32.mxu1 %v3002_v37 }
 0x1ca   :  { %v874_v62 = vpop.f32.mrb[0].mxu1 }
 0x1cb   :  { %v875_v38 = vadd.f32 %v874_v62, %v3791_v58  ;;  %v876_v3 = vpop.f32.mrb[1].mxu1  ;;  %1191 = vmatmul.mubr.f32.gmra.mrb[106].mxu1 %v753_v29 }
 0x1cc   :  { %v877_v36 = vadd.f32 %v876_v3, %v3794_v59  ;;  %1196 = vmatprep.mubr.f32.mxu1 %v3002_v37 }
 0x1cd   :  { %v1257_v42 = vmax.f32 %v875_v38, 0.0 }
 0x1ce   :  { %v1258_v34 = vmax.f32 %v877_v36, 0.0  ;;  %v880_v4 = vpop.f32.mrb[2].mxu1 }
 0x1cf   :  { %v881_v57 = vadd.f32 %v880_v4, %v3791_v58  ;;  %v882_v41 = vpop.f32.mrb[3].mxu1  ;;  %1197 = vmatmul.mubr.f32.gmra.mrb[108].mxu1 %v754_v63  ;;  %v761_v4 = vmax.f32 %v687_v50, 0.0 }
 0x1d0   :  { %v883_v49 = vadd.f32 %v882_v41, %v3794_v59  ;;  %1488 = vmatprep.mubr.f32.mxu0 %v1258_v34  ;;  %1202 = vmatprep.mubr.f32.mxu1 %v3002_v37  ;;  %v762_v41 = vmax.f32 %v692_v28, 0.0 }
 0x1d1   :  { %1489 = vmatmul.mubr.f32.vlgmr.msra.gmra.mrb[64].mxu0 %v1257_v42  ;;  %v1259_v33 = vmax.f32 %v881_v57, 0.0 }
 0x1d2   :  { %v1260_v48 = vmax.f32 %v883_v49, 0.0  ;;  %v886_v11 = vpop.f32.mrb[4].mxu1  ;;  %2900 = vmatpush3.bf16.msra.mxu0 %v2897_v19  ;;  %v677_v19 = vadd.f32 %v3696_v44, %v3461_v6 }
 0x1d3   :  { %v887_v8 = vadd.f32 %v886_v11, %v3791_v58  ;;  %v888_v52 = vpop.f32.mrb[5].mxu1  ;;  %1203 = vmatmul.mubr.f32.gmra.mrb[110].mxu1 %v755_v2  ;;  %2902 = vmatprep.subr.bf16.mxu0 %v2901_v39 }
 0x1d4   :  { %v889_v16 = vadd.f32 %v888_v52, %v3794_v59  ;;  %1493 = vmatprep.mubr.f32.mxu0 %v1260_v48  ;;  %1208 = vmatprep.mubr.f32.mxu1 %v3002_v37  ;;  %v759_v51 = vmax.f32 %v677_v19, 0.0 }
 0x1d5   :  { %1494 = vmatmul.mubr.f32.gmra.mrb[66].mxu0 %v1259_v33  ;;  %v1261_v1 = vmax.f32 %v887_v8, 0.0 }
 0x1d6   :  { %v1262_v61 = vmax.f32 %v889_v16, 0.0  ;;  %v892_v17 = vpop.f32.mrb[6].mxu1  ;;  %2904 = vmatpush3.bf16.msra.mxu0 %v2901_v39  ;;  %v763_v16 = vmax.f32 %v697_v55, 0.0 }
 0x1d7   :  { %v893_v7 = vadd.f32 %v892_v17, %v3791_v58  ;;  %v894_v0 = vpop.f32.mrb[7].mxu1  ;;  %1209 = vmatmul.mubr.f32.gmra.mrb[112].mxu1 %v756_v53 }
 0x1d8   :  { %v895_v10 = vadd.f32 %v894_v0, %v3794_v59  ;;  %1498 = vmatprep.mubr.f32.mxu0 %v1262_v61  ;;  %1214 = vmatprep.mubr.f32.mxu1 %v3002_v37 }
 0x1d9   :  { %1499 = vmatmul.mubr.f32.gmra.mrb[68].mxu0 %v1261_v1  ;;  %v1263_v13 = vmax.f32 %v893_v7, 0.0  ;;  %v1877_v7 = vld [vmem:[%s4172_s7 + $0x20] sm:$0xff] }
 0x1da   :  { %v1264_v9 = vmax.f32 %v895_v10, 0.0  ;;  %v898_v32 = vpop.f32.mrb[8].mxu1 }
 0x1db   :  { %v899_v12 = vadd.f32 %v898_v32, %v3791_v58  ;;  %v900_v21 = vpop.f32.mrb[9].mxu1  ;;  %1215 = vmatmul.mubr.f32.gmra.mrb[114].mxu1 %v757_v27 }
 0x1dc   :  { %v901_v45 = vadd.f32 %v900_v21, %v3794_v59  ;;  %1503 = vmatprep.mubr.f32.mxu0 %v1264_v9  ;;  %1220 = vmatprep.mubr.f32.mxu1 %v3002_v37 }
 0x1dd   :  { %1504 = vmatmul.mubr.f32.gmra.mrb[70].mxu0 %v1263_v13  ;;  %v1265_v43 = vmax.f32 %v899_v12, 0.0 }
 0x1de   :  { %v1266_v35 = vmax.f32 %v901_v45, 0.0  ;;  %v904_v20 = vpop.f32.mrb[10].mxu1 }
 0x1df   :  { %v905_v18 = vadd.f32 %v904_v20, %v3791_v58  ;;  %v906_v26 = vpop.f32.mrb[11].mxu1  ;;  %1221 = vmatmul.mubr.f32.gmra.mrb[116].mxu1 %v758_v14 }
 0x1e0   :  { %v907_v46 = vadd.f32 %v906_v26, %v3794_v59  ;;  %1508 = vmatprep.mubr.f32.mxu0 %v1266_v35  ;;  %1226 = vmatprep.mubr.f32.mxu1 %v3002_v37 }
 0x1e1   :  { %1509 = vmatmul.mubr.f32.gmra.mrb[72].mxu0 %v1265_v43  ;;  %v1267_v30 = vmax.f32 %v905_v18, 0.0 }
 0x1e2   :  { %v1268_v25 = vmax.f32 %v907_v46, 0.0  ;;  %v910_v44 = vpop.f32.mrb[12].mxu1 }
 0x1e3   :  { %v911_v23 = vadd.f32 %v910_v44, %v3791_v58  ;;  %v912_v31 = vpop.f32.mrb[13].mxu1  ;;  %1227 = vmatmul.mubr.f32.gmra.mrb[118].mxu1 %v759_v51 }
 0x1e4   :  { %v913_v29 = vadd.f32 %v912_v31, %v3794_v59  ;;  %1513 = vmatprep.mubr.f32.mxu0 %v1268_v25  ;;  %1232 = vmatprep.mubr.f32.mxu1 %v3002_v37 }
 0x1e5   :  { %1514 = vmatmul.mubr.f32.gmra.mrb[74].mxu0 %v1267_v30  ;;  %v1269_v38 = vmax.f32 %v911_v23, 0.0 }
 0x1e6   :  { %v1270_v62 = vmax.f32 %v913_v29, 0.0  ;;  %v916_v63 = vpop.f32.mrb[14].mxu1 }
 0x1e7   :  { %v917_v3 = vadd.f32 %v916_v63, %v3791_v58  ;;  %v918_v36 = vpop.f32.mrb[15].mxu1  ;;  %1233 = vmatmul.mubr.f32.gmra.mrb[120].mxu1 %v760_v56 }
 0x1e8   :  { %v919_v34 = vadd.f32 %v918_v36, %v3794_v59  ;;  %1518 = vmatprep.mubr.f32.mxu0 %v1270_v62  ;;  %1238 = vmatprep.mubr.f32.mxu1 %v3002_v37 }
 0x1e9   :  { %1519 = vmatmul.mubr.f32.gmra.mrb[76].mxu0 %v1269_v38  ;;  %v1271_v57 = vmax.f32 %v917_v3, 0.0 }
 0x1ea   :  { %v1272_v42 = vmax.f32 %v919_v34, 0.0  ;;  %v922_v47 = vpop.f32.mrb[16].mxu1 }
 0x1eb   :  { %v923_v5 = vadd.f32 %v922_v47, %v3791_v58  ;;  %v924_v49 = vpop.f32.mrb[17].mxu1  ;;  %1239 = vmatmul.mubr.f32.gmra.mrb[122].mxu1 %v761_v4 }
 0x1ec   :  { %v925_v2 = vadd.f32 %v924_v49, %v3794_v59  ;;  %1523 = vmatprep.mubr.f32.mxu0 %v1272_v42  ;;  %1244 = vmatprep.mubr.f32.mxu1 %v3002_v37 }
 0x1ed   :  { %1524 = vmatmul.mubr.f32.gmra.mrb[78].mxu0 %v1271_v57  ;;  %v1273_v33 = vmax.f32 %v923_v5, 0.0 }
 0x1ee   :  { %v1274_v48 = vmax.f32 %v925_v2, 0.0  ;;  %v928_v11 = vpop.f32.mrb[18].mxu1 }
 0x1ef   :  { %v929_v53 = vadd.f32 %v928_v11, %v3791_v58  ;;  %v930_v8 = vpop.f32.mrb[19].mxu1  ;;  %1245 = vmatmul.mubr.f32.gmra.mrb[124].mxu1 %v762_v41 }
 0x1f0   :  { %v931_v52 = vadd.f32 %v930_v8, %v3794_v59  ;;  %1528 = vmatprep.mubr.f32.mxu0 %v1274_v48  ;;  %1250 = vmatprep.mubr.f32.mxu1 %v3002_v37  ;;  %v1878_v37 = vld [vmem:[%s4172_s7 + $0x28] sm:$0xff]  ;;  %v1879_v8 = vld [vmem:[%s4172_s7 + $0x30] sm:$0xff] }
 0x1f1   :  { %1529 = vmatmul.mubr.f32.gmra.mrb[80].mxu0 %v1273_v33  ;;  %v1275_v17 = vmax.f32 %v929_v53, 0.0  ;;  %v2905_v10 = vpack.c.bf16 %v1878_v37, %v1877_v7 }
 0x1f2   :  { %v1276_v40 = vmax.f32 %v931_v52, 0.0  ;;  %v934_v61 = vpop.f32.mrb[20].mxu1  ;;  %v1880_v52 = vld [vmem:[%s4172_s7 + $0x38] sm:$0xff] }
 0x1f3   :  { %v935_v6 = vadd.f32 %v934_v61, %v3791_v58  ;;  %v936_v54 = vpop.f32.mrb[21].mxu1  ;;  %1251 = vmatmul.mubr.f32.gmra.mrb[126].mxu1 %v763_v16  ;;  %2931 = vmatprep.subr.bf16.mxu1 %v2905_v10 }
 0x1f4   :  { %v937_v60 = vadd.f32 %v936_v54, %v3794_v59  ;;  %1533 = vmatprep.mubr.f32.mxu0 %v1276_v40  ;;  %2939 = vmatpush3.bf16.msra.mxu1 %v2905_v10 }
 0x1f5   :  { %1534 = vmatmul.mubr.f32.gmra.mrb[82].mxu0 %v1275_v17  ;;  %v1277_v0 = vmax.f32 %v935_v6, 0.0  ;;  %2906 = vmatprep.subr.bf16.mxu0 %v2905_v10  ;;  %v2909_v17 = vpack.c.bf16 %v1880_v52, %v1879_v8  ;;  %v1885_v52 = vld [vmem:[%s4172_s7 + $0x60] sm:$0xff] }
 0x1f6   :  { %v1278_v22 = vmax.f32 %v937_v60, 0.0  ;;  %v940_v1 = vpop.f32.mrb[22].mxu1  ;;  %2908 = vmatpush3.bf16.msra.mxu0 %v2905_v10 }
 0x1f7   :  { %v941_v15 = vadd.f32 %v940_v1, %v3791_v58  ;;  %v942_v39 = vpop.f32.mrb[23].mxu1  ;;  %2932 = vmatprep.subr.bf16.mxu1 %v2909_v17  ;;  %2910 = vmatprep.subr.bf16.mxu0 %v2909_v17 }
 0x1f8   :  { %v943_v27 = vadd.f32 %v942_v39, %v3794_v59  ;;  %1538 = vmatprep.mubr.f32.mxu0 %v1278_v22  ;;  %2940 = vmatpush3.bf16.msra.mxu1 %v2909_v17 }
 0x1f9   :  { %1539 = vmatmul.mubr.f32.gmra.mrb[84].mxu0 %v1277_v0  ;;  %v1279_v13 = vmax.f32 %v941_v15, 0.0 }
 0x1fa   :  { %v1280_v9 = vmax.f32 %v943_v27, 0.0  ;;  %v946_v32 = vpop.f32.mrb[24].mxu1  ;;  %2912 = vmatpush3.bf16.msra.mxu0 %v2909_v17 }
 0x1fb   :  { %v947_v14 = vadd.f32 %v946_v32, %v3791_v58  ;;  %v948_v12 = vpop.f32.mrb[25].mxu1 }
 0x1fc   :  { %v949_v21 = vadd.f32 %v948_v12, %v3794_v59  ;;  %1543 = vmatprep.mubr.f32.mxu0 %v1280_v9 }
 0x1fd   :  { %1544 = vmatmul.mubr.f32.gmra.mrb[86].mxu0 %v1279_v13  ;;  %v1281_v35 = vmax.f32 %v947_v14, 0.0 }
 0x1fe   :  { %v1282_v45 = vmax.f32 %v949_v21, 0.0  ;;  %v952_v19 = vpop.f32.mrb[26].mxu1 }
 0x1ff   :  { %v953_v20 = vadd.f32 %v952_v19, %v3791_v58  ;;  %v954_v43 = vpop.f32.mrb[27].mxu1 }
 0x200   :  { %v955_v18 = vadd.f32 %v954_v43, %v3794_v59  ;;  %1548 = vmatprep.mubr.f32.mxu0 %v1282_v45 }
 0x201   :  { %1549 = vmatmul.mubr.f32.gmra.mrb[88].mxu0 %v1281_v35  ;;  %v1283_v46 = vmax.f32 %v953_v20, 0.0 }
 0x202   :  { %v1284_v26 = vmax.f32 %v955_v18, 0.0  ;;  %v958_v24 = vpop.f32.mrb[28].mxu1 }
 0x203   :  { %v959_v51 = vadd.f32 %v958_v24, %v3791_v58  ;;  %v960_v25 = vpop.f32.mrb[29].mxu1 }
 0x204   :  { %v961_v44 = vadd.f32 %v960_v25, %v3794_v59  ;;  %1553 = vmatprep.mubr.f32.mxu0 %v1284_v26 }
 0x205   :  { %1554 = vmatmul.mubr.f32.gmra.mrb[90].mxu0 %v1283_v46  ;;  %v1285_v23 = vmax.f32 %v959_v51, 0.0 }
 0x206   :  { %v1286_v30 = vmax.f32 %v961_v44, 0.0  ;;  %v964_v56 = vpop.f32.mrb[30].mxu1 }
 0x207   :  { %v965_v31 = vadd.f32 %v964_v56, %v3791_v58  ;;  %v966_v29 = vpop.f32.mrb[31].mxu1 }
 0x208   :  { %v967_v50 = vadd.f32 %v966_v29, %v3794_v59  ;;  %1558 = vmatprep.mubr.f32.mxu0 %v1286_v30 }
 0x209   :  { %1559 = vmatmul.mubr.f32.gmra.mrb[92].mxu0 %v1285_v23  ;;  %v1287_v38 = vmax.f32 %v965_v31, 0.0 }
 0x20a   :  { %v1288_v62 = vmax.f32 %v967_v50, 0.0  ;;  %v970_v63 = vpop.f32.mrb[32].mxu1 }
 0x20b   :  { %v971_v3 = vadd.f32 %v970_v63, %v3791_v58  ;;  %v972_v36 = vpop.f32.mrb[33].mxu1 }
 0x20c   :  { %v973_v28 = vadd.f32 %v972_v36, %v3794_v59  ;;  %1563 = vmatprep.mubr.f32.mxu0 %v1288_v62  ;;  %v1882_v36 = vld [vmem:[%s4172_s7 + $0x48] sm:$0xff] }
 0x20d   :  { %1564 = vmatmul.mubr.f32.gmra.mrb[94].mxu0 %v1287_v38  ;;  %v1289_v42 = vmax.f32 %v971_v3, 0.0  ;;  %v1881_v3 = vld [vmem:[%s4172_s7 + $0x40] sm:$0xff] }
 0x20e   :  { %v1290_v34 = vmax.f32 %v973_v28, 0.0  ;;  %v976_v4 = vpop.f32.mrb[34].mxu1 }
 0x20f   :  { %v977_v47 = vadd.f32 %v976_v4, %v3791_v58  ;;  %v978_v57 = vpop.f32.mrb[35].mxu1 }
 0x210   :  { %v979_v41 = vadd.f32 %v978_v57, %v3794_v59  ;;  %1568 = vmatprep.mubr.f32.mxu0 %v1290_v34 }
 0x211   :  { %1569 = vmatmul.mubr.f32.gmra.mrb[96].mxu0 %v1289_v42  ;;  %v1291_v2 = vmax.f32 %v977_v47, 0.0  ;;  %v2913_v42 = vpack.c.bf16 %v1882_v36, %v1881_v3 }
 0x212   :  { %v1292_v5 = vmax.f32 %v979_v41, 0.0  ;;  %v982_v49 = vpop.f32.mrb[36].mxu1 }
 0x213   :  { %v983_v55 = vadd.f32 %v982_v49, %v3791_v58  ;;  %v984_v48 = vpop.f32.mrb[37].mxu1  ;;  %2933 = vmatprep.subr.bf16.mxu1 %v2913_v42  ;;  %v1884_v49 = vld [vmem:[%s4172_s7 + $0x58] sm:$0xff]  ;;  %2914 = vmatprep.subr.bf16.mxu0 %v2913_v42 }
 0x214   :  { %v985_v11 = vadd.f32 %v984_v48, %v3794_v59  ;;  %1573 = vmatprep.mubr.f32.mxu0 %v1292_v5  ;;  %2941 = vmatpush3.bf16.msra.mxu1 %v2913_v42  ;;  %v1883_v5 = vld [vmem:[%s4172_s7 + $0x50] sm:$0xff] }
 0x215   :  { %1574 = vmatmul.mubr.f32.gmra.mrb[98].mxu0 %v1291_v2  ;;  %v1293_v16 = vmax.f32 %v983_v55, 0.0 }
 0x216   :  { %v1294_v33 = vmax.f32 %v985_v11, 0.0  ;;  %v988_v53 = vpop.f32.mrb[38].mxu1  ;;  %v2917_v11 = vpack.c.bf16 %v1884_v49, %v1883_v5  ;;  %2916 = vmatpush3.bf16.msra.mxu0 %v2913_v42 }
 0x217   :  { %v989_v40 = vadd.f32 %v988_v53, %v3791_v58  ;;  %v990_v61 = vpop.f32.mrb[39].mxu1 }
 0x218   :  { %v991_v6 = vadd.f32 %v990_v61, %v3794_v59  ;;  %1578 = vmatprep.mubr.f32.mxu0 %v1294_v33  ;;  %2934 = vmatprep.subr.bf16.mxu1 %v2917_v11 }
 0x219   :  { %1579 = vmatmul.mubr.f32.gmra.mrb[100].mxu0 %v1293_v16  ;;  %v1295_v22 = vmax.f32 %v989_v40, 0.0  ;;  %2942 = vmatpush3.bf16.msra.mxu1 %v2917_v11  ;;  %v1886_v16 = vld [vmem:[%s4172_s7 + $0x68] sm:$0xff] }
 0x21a   :  { %v1296_v54 = vmax.f32 %v991_v6, 0.0  ;;  %v994_v60 = vpop.f32.mrb[40].mxu1  ;;  %2918 = vmatprep.subr.bf16.mxu0 %v2917_v11  ;;  %v2921_v6 = vpack.c.bf16 %v1886_v16, %v1885_v52 }
 0x21b   :  { %v995_v1 = vadd.f32 %v994_v60, %v3791_v58  ;;  %v996_v7 = vpop.f32.mrb[41].mxu1  ;;  %2920 = vmatpush3.bf16.msra.mxu0 %v2917_v11 }
 0x21c   :  { %v997_v37 = vadd.f32 %v996_v7, %v3794_v59  ;;  %1583 = vmatprep.mubr.f32.mxu0 %v1296_v54  ;;  %2935 = vmatprep.subr.bf16.mxu1 %v2921_v6  ;;  %v1888_v7 = vld [vmem:[%s4172_s7 + $0x78] sm:$0xff] }
 0x21d   :  { %1584 = vmatmul.mubr.f32.gmra.mrb[102].mxu0 %v1295_v22  ;;  %v1297_v39 = vmax.f32 %v995_v1, 0.0  ;;  %2943 = vmatpush3.bf16.msra.mxu1 %v2921_v6  ;;  %v1887_v1 = vld [vmem:[%s4172_s7 + $0x70] sm:$0xff] }
 0x21e   :  { %v1298_v0 = vmax.f32 %v997_v37, 0.0  ;;  %v1000_v15 = vpop.f32.mrb[42].mxu1  ;;  %2922 = vmatprep.subr.bf16.mxu0 %v2921_v6 }
 0x21f   :  { %v1001_v10 = vadd.f32 %v1000_v15, %v3791_v58  ;;  %v1002_v27 = vpop.f32.mrb[43].mxu1  ;;  %2924 = vmatpush3.bf16.msra.mxu0 %v2921_v6 }
 0x220   :  { %v1003_v9 = vadd.f32 %v1002_v27, %v3794_v59  ;;  %1588 = vmatprep.mubr.f32.mxu0 %v1298_v0 }
 0x221   :  { %1589 = vmatmul.mubr.f32.gmra.mrb[104].mxu0 %v1297_v39  ;;  %v1299_v14 = vmax.f32 %v1001_v10, 0.0  ;;  %v2925_v39 = vpack.c.bf16 %v1888_v7, %v1887_v1 }
 0x222   :  { %v1300_v32 = vmax.f32 %v1003_v9, 0.0  ;;  %v1006_v13 = vpop.f32.mrb[44].mxu1 }
 0x223   :  { %v1007_v12 = vadd.f32 %v1006_v13, %v3791_v58  ;;  %v1008_v21 = vpop.f32.mrb[45].mxu1  ;;  %2936 = vmatprep.subr.bf16.mxu1 %v2925_v39  ;;  %2926 = vmatprep.subr.bf16.mxu0 %v2925_v39 }
 0x224   :  { %v1009_v45 = vadd.f32 %v1008_v21, %v3794_v59  ;;  %1593 = vmatprep.mubr.f32.mxu0 %v1300_v32  ;;  %2944 = vmatpush3.bf16.msra.mxu1 %v2925_v39 }
 0x225   :  { %1594 = vmatmul.mubr.f32.gmra.mrb[106].mxu0 %v1299_v14  ;;  %v1301_v20 = vmax.f32 %v1007_v12, 0.0 }
 0x226   :  { %v1302_v19 = vmax.f32 %v1009_v45, 0.0  ;;  %v1012_v35 = vpop.f32.mrb[46].mxu1  ;;  %2928 = vmatpush3.bf16.msra.mxu0 %v2925_v39 }
 0x227   :  { %v1013_v43 = vadd.f32 %v1012_v35, %v3791_v58  ;;  %v1014_v18 = vpop.f32.mrb[47].mxu1 }
 0x228   :  { %v1015_v26 = vadd.f32 %v1014_v18, %v3794_v59  ;;  %1598 = vmatprep.mubr.f32.mxu0 %v1302_v19 }
 0x229   :  { %1599 = vmatmul.mubr.f32.gmra.mrb[108].mxu0 %v1301_v20  ;;  %v1303_v51 = vmax.f32 %v1013_v43, 0.0 }
 0x22a   :  { %v1304_v24 = vmax.f32 %v1015_v26, 0.0  ;;  %v1018_v46 = vpop.f32.mrb[48].mxu1 }
 0x22b   :  { %v1019_v25 = vadd.f32 %v1018_v46, %v3791_v58  ;;  %v1020_v44 = vpop.f32.mrb[49].mxu1 }
 0x22c   :  { %v1021_v30 = vadd.f32 %v1020_v44, %v3794_v59  ;;  %1603 = vmatprep.mubr.f32.mxu0 %v1304_v24 }
 0x22d   :  { %1604 = vmatmul.mubr.f32.gmra.mrb[110].mxu0 %v1303_v51  ;;  %v1305_v31 = vmax.f32 %v1019_v25, 0.0 }
 0x22e   :  { %v1306_v56 = vmax.f32 %v1021_v30, 0.0  ;;  %v1024_v23 = vpop.f32.mrb[50].mxu1 }
 0x22f   :  { %v1025_v29 = vadd.f32 %v1024_v23, %v3791_v58  ;;  %v1026_v50 = vpop.f32.mrb[51].mxu1 }
 0x230   :  { %v1027_v62 = vadd.f32 %v1026_v50, %v3794_v59  ;;  %1608 = vmatprep.mubr.f32.mxu0 %v1306_v56 }
 0x231   :  { %1609 = vmatmul.mubr.f32.gmra.mrb[112].mxu0 %v1305_v31  ;;  %v1307_v28 = vmax.f32 %v1025_v29, 0.0 }
 0x232   :  { %v1308_v63 = vmax.f32 %v1027_v62, 0.0  ;;  %v1030_v38 = vpop.f32.mrb[52].mxu1 }
 0x233   :  { %v1031_v34 = vadd.f32 %v1030_v38, %v3791_v58  ;;  %v1032_v4 = vpop.f32.mrb[53].mxu1 }
 0x234   :  { %v1033_v47 = vadd.f32 %v1032_v4, %v3794_v59  ;;  %1613 = vmatprep.mubr.f32.mxu0 %v1308_v63 }
 0x235   :  { %1614 = vmatmul.mubr.f32.gmra.mrb[114].mxu0 %v1307_v28  ;;  %v1309_v2 = vmax.f32 %v1031_v34, 0.0 }
 0x236   :  { %v1310_v57 = vmax.f32 %v1033_v47, 0.0  ;;  %v1036_v41 = vpop.f32.mrb[54].mxu1 }
 0x237   :  { %v1037_v55 = vadd.f32 %v1036_v41, %v3791_v58  ;;  %v1038_v48 = vpop.f32.mrb[55].mxu1 }
 0x238   :  { %v1039_v33 = vadd.f32 %v1038_v48, %v3794_v59  ;;  %1618 = vmatprep.mubr.f32.mxu0 %v1310_v57 }
 0x239   :  { %1619 = vmatmul.mubr.f32.gmra.mrb[116].mxu0 %v1309_v2  ;;  %v1311_v40 = vmax.f32 %v1037_v55, 0.0 }
 0x23a   :  { %v1312_v53 = vmax.f32 %v1039_v33, 0.0  ;;  %v1042_v8 = vpop.f32.mrb[56].mxu1 }
 0x23b   :  { %v1043_v61 = vadd.f32 %v1042_v8, %v3791_v58  ;;  %v1044_v17 = vpop.f32.mrb[57].mxu1 }
 0x23c   :  { %v1045_v54 = vadd.f32 %v1044_v17, %v3794_v59  ;;  %1623 = vmatprep.mubr.f32.mxu0 %v1312_v53 }
 0x23d   :  { %1624 = vmatmul.mubr.f32.gmra.mrb[118].mxu0 %v1311_v40  ;;  %v1313_v37 = vmax.f32 %v1043_v61, 0.0 }
 0x23e   :  { %v1314_v60 = vmax.f32 %v1045_v54, 0.0  ;;  %v1048_v22 = vpop.f32.mrb[58].mxu1 }
 0x23f   :  { %v1049_v0 = vadd.f32 %v1048_v22, %v3791_v58  ;;  %v1050_v15 = vpop.f32.mrb[59].mxu1 }
 0x240   :  { %v1051_v10 = vadd.f32 %v1050_v15, %v3794_v59  ;;  %1628 = vmatprep.mubr.f32.mxu0 %v1314_v60 }
 0x241   :  { %1629 = vmatmul.mubr.f32.gmra.mrb[120].mxu0 %v1313_v37  ;;  %v1315_v32 = vmax.f32 %v1049_v0, 0.0 }
 0x242   :  { %v1316_v27 = vmax.f32 %v1051_v10, 0.0  ;;  %v1054_v9 = vpop.f32.mrb[60].mxu1 }
 0x243   :  { %v1055_v13 = vadd.f32 %v1054_v9, %v3791_v58  ;;  %v1056_v14 = vpop.f32.mrb[61].mxu1 }
 0x244   :  { %v1057_v12 = vadd.f32 %v1056_v14, %v3794_v59  ;;  %1633 = vmatprep.mubr.f32.mxu0 %v1316_v27 }
 0x245   :  { %1634 = vmatmul.mubr.f32.gmra.mrb[122].mxu0 %v1315_v32  ;;  %v1317_v19 = vmax.f32 %v1055_v13, 0.0 }
 0x246   :  { %v1318_v21 = vmax.f32 %v1057_v12, 0.0  ;;  %v1060_v45 = vpop.f32.mrb[62].mxu1 }
 0x247   :  { %v1061_v35 = vadd.f32 %v1060_v45, %v3791_v58  ;;  %v1062_v20 = vpop.f32.mrb[63].mxu1 }
 0x248   :  { %v1063_v43 = vadd.f32 %v1062_v20, %v3794_v59  ;;  %1638 = vmatprep.mubr.f32.mxu0 %v1318_v21 }
 0x249   :  { %1639 = vmatmul.mubr.f32.gmra.mrb[124].mxu0 %v1317_v19  ;;  %v1319_v24 = vmax.f32 %v1061_v35, 0.0 }
 0x24a   :  { %v1320_v18 = vmax.f32 %v1063_v43, 0.0  ;;  %v1066_v26 = vpop.f32.mrb[64].mxu1 }
 0x24b   :  { %v1067_v46 = vadd.f32 %v1066_v26, %v3791_v58  ;;  %v1068_v51 = vpop.f32.mrb[65].mxu1 }
 0x24c   :  { %v1069_v25 = vadd.f32 %v1068_v51, %v3794_v59  ;;  %1643 = vmatprep.mubr.f32.mxu0 %v1320_v18 }
 0x24d   :  { %1644 = vmatmul.mubr.f32.gmra.mrb[126].mxu0 %v1319_v24  ;;  %v1321_v56 = vmax.f32 %v1067_v46, 0.0 }
 0x24e   :  { %v1322_v44 = vmax.f32 %v1069_v25, 0.0  ;;  %v1072_v30 = vpop.f32.mrb[66].mxu1 }
 0x24f   :  { %v1073_v23 = vadd.f32 %v1072_v30, %v3791_v58  ;;  %v1074_v31 = vpop.f32.mrb[67].mxu1 }
 0x250   :  { %v1075_v29 = vadd.f32 %v1074_v31, %v3794_v59  ;;  %1648 = vmatprep.mubr.f32.mxu0 %v1322_v44 }
 0x251   :  { %1649 = vmatmul.mubr.f32.gmra.mrb[128].mxu0 %v1321_v56  ;;  %v1323_v63 = vmax.f32 %v1073_v23, 0.0 }
 0x252   :  { %v1324_v50 = vmax.f32 %v1075_v29, 0.0  ;;  %v1078_v62 = vpop.f32.mrb[68].mxu1 }
 0x253   :  { %v1079_v38 = vadd.f32 %v1078_v62, %v3791_v58  ;;  %v1080_v3 = vpop.f32.mrb[69].mxu1 }
 0x254   :  { %v1081_v36 = vadd.f32 %v1080_v3, %v3794_v59  ;;  %1653 = vmatprep.mubr.f32.mxu0 %v1324_v50 }
 0x255   :  { %1654 = vmatmul.mubr.f32.gmra.mrb[130].mxu0 %v1323_v63  ;;  %v1325_v4 = vmax.f32 %v1079_v38, 0.0 }
 0x256   :  { %v1326_v28 = vmax.f32 %v1081_v36, 0.0  ;;  %v1084_v34 = vpop.f32.mrb[70].mxu1 }
 0x257   :  { %v1085_v42 = vadd.f32 %v1084_v34, %v3791_v58  ;;  %v1086_v47 = vpop.f32.mrb[71].mxu1 }
 0x258   :  { %v1087_v57 = vadd.f32 %v1086_v47, %v3794_v59  ;;  %1658 = vmatprep.mubr.f32.mxu0 %v1326_v28 }
 0x259   :  { %1659 = vmatmul.mubr.f32.gmra.mrb[132].mxu0 %v1325_v4  ;;  %v1327_v49 = vmax.f32 %v1085_v42, 0.0 }
 0x25a   :  { %v1328_v41 = vmax.f32 %v1087_v57, 0.0  ;;  %v1090_v5 = vpop.f32.mrb[72].mxu1 }
 0x25b   :  { %v1091_v2 = vadd.f32 %v1090_v5, %v3791_v58  ;;  %v1092_v55 = vpop.f32.mrb[73].mxu1 }
 0x25c   :  { %v1093_v48 = vadd.f32 %v1092_v55, %v3794_v59  ;;  %1663 = vmatprep.mubr.f32.mxu0 %v1328_v41 }
 0x25d   :  { %1664 = vmatmul.mubr.f32.gmra.mrb[134].mxu0 %v1327_v49  ;;  %v1329_v53 = vmax.f32 %v1091_v2, 0.0 }
 0x25e   :  { %v1330_v11 = vmax.f32 %v1093_v48, 0.0  ;;  %v1096_v33 = vpop.f32.mrb[74].mxu1 }
 0x25f   :  { %v1097_v8 = vadd.f32 %v1096_v33, %v3791_v58  ;;  %v1098_v52 = vpop.f32.mrb[75].mxu1 }
 0x260   :  { %v1099_v16 = vadd.f32 %v1098_v52, %v3794_v59  ;;  %1668 = vmatprep.mubr.f32.mxu0 %v1330_v11 }
 0x261   :  { %1669 = vmatmul.mubr.f32.gmra.mrb[136].mxu0 %v1329_v53  ;;  %v1331_v17 = vmax.f32 %v1097_v8, 0.0 }
 0x262   :  { %v1332_v40 = vmax.f32 %v1099_v16, 0.0  ;;  %v1102_v61 = vpop.f32.mrb[76].mxu1 }
 0x263   :  { %v1103_v6 = vadd.f32 %v1102_v61, %v3791_v58  ;;  %v1104_v54 = vpop.f32.mrb[77].mxu1 }
 0x264   :  { %v1105_v60 = vadd.f32 %v1104_v54, %v3794_v59  ;;  %1673 = vmatprep.mubr.f32.mxu0 %v1332_v40 }
 0x265   :  { %1674 = vmatmul.mubr.f32.gmra.mrb[138].mxu0 %v1331_v17  ;;  %v1333_v7 = vmax.f32 %v1103_v6, 0.0 }
 0x266   :  { %v1334_v22 = vmax.f32 %v1105_v60, 0.0  ;;  %v1108_v1 = vpop.f32.mrb[78].mxu1 }
 0x267   :  { %v1109_v37 = vadd.f32 %v1108_v1, %v3791_v58  ;;  %v1110_v0 = vpop.f32.mrb[79].mxu1 }
 0x268   :  { %v1111_v15 = vadd.f32 %v1110_v0, %v3794_v59  ;;  %1678 = vmatprep.mubr.f32.mxu0 %v1334_v22 }
 0x269   :  { %1679 = vmatmul.mubr.f32.gmra.mrb[140].mxu0 %v1333_v7  ;;  %v1335_v27 = vmax.f32 %v1109_v37, 0.0 }
 0x26a   :  { %v1336_v39 = vmax.f32 %v1111_v15, 0.0  ;;  %v1114_v10 = vpop.f32.mrb[80].mxu1 }
 0x26b   :  { %v1115_v9 = vadd.f32 %v1114_v10, %v3791_v58  ;;  %v1116_v32 = vpop.f32.mrb[81].mxu1 }
 0x26c   :  { %v1117_v13 = vadd.f32 %v1116_v32, %v3794_v59  ;;  %1683 = vmatprep.mubr.f32.mxu0 %v1336_v39 }
 0x26d   :  { %1684 = vmatmul.mubr.f32.gmra.mrb[142].mxu0 %v1335_v27  ;;  %v1337_v21 = vmax.f32 %v1115_v9, 0.0 }
 0x26e   :  { %v1338_v14 = vmax.f32 %v1117_v13, 0.0  ;;  %v1120_v12 = vpop.f32.mrb[82].mxu1 }
 0x26f   :  { %v1121_v45 = vadd.f32 %v1120_v12, %v3791_v58  ;;  %v1122_v19 = vpop.f32.mrb[83].mxu1 }
 0x270   :  { %v1123_v35 = vadd.f32 %v1122_v19, %v3794_v59  ;;  %1688 = vmatprep.mubr.f32.mxu0 %v1338_v14 }
 0x271   :  { %1689 = vmatmul.mubr.f32.gmra.mrb[144].mxu0 %v1337_v21  ;;  %v1339_v18 = vmax.f32 %v1121_v45, 0.0 }
 0x272   :  { %v1340_v20 = vmax.f32 %v1123_v35, 0.0  ;;  %v1126_v43 = vpop.f32.mrb[84].mxu1 }
 0x273   :  { %v1127_v26 = vadd.f32 %v1126_v43, %v3791_v58  ;;  %v1128_v24 = vpop.f32.mrb[85].mxu1 }
 0x274   :  { %v1129_v46 = vadd.f32 %v1128_v24, %v3794_v59  ;;  %1693 = vmatprep.mubr.f32.mxu0 %v1340_v20 }
 0x275   :  { %1694 = vmatmul.mubr.f32.gmra.mrb[146].mxu0 %v1339_v18  ;;  %v1341_v44 = vmax.f32 %v1127_v26, 0.0 }
 0x276   :  { %v1342_v51 = vmax.f32 %v1129_v46, 0.0  ;;  %v1132_v25 = vpop.f32.mrb[86].mxu1 }
 0x277   :  { %v1133_v30 = vadd.f32 %v1132_v25, %v3791_v58  ;;  %v1134_v56 = vpop.f32.mrb[87].mxu1 }
 0x278   :  { %v1135_v23 = vadd.f32 %v1134_v56, %v3794_v59  ;;  %1698 = vmatprep.mubr.f32.mxu0 %v1342_v51 }
 0x279   :  { %1699 = vmatmul.mubr.f32.gmra.mrb[148].mxu0 %v1341_v44  ;;  %v1343_v50 = vmax.f32 %v1133_v30, 0.0 }
 0x27a   :  { %v1344_v31 = vmax.f32 %v1135_v23, 0.0  ;;  %v1138_v29 = vpop.f32.mrb[88].mxu1 }
 0x27b   :  { %v1139_v62 = vadd.f32 %v1138_v29, %v3791_v58  ;;  %v1140_v63 = vpop.f32.mrb[89].mxu1 }
 0x27c   :  { %v1141_v38 = vadd.f32 %v1140_v63, %v3794_v59  ;;  %1703 = vmatprep.mubr.f32.mxu0 %v1344_v31 }
 0x27d   :  { %1704 = vmatmul.mubr.f32.gmra.mrb[150].mxu0 %v1343_v50  ;;  %v1345_v28 = vmax.f32 %v1139_v62, 0.0 }
 0x27e   :  { %v1346_v3 = vmax.f32 %v1141_v38, 0.0  ;;  %v1144_v36 = vpop.f32.mrb[90].mxu1 }
 0x27f   :  { %v1145_v34 = vadd.f32 %v1144_v36, %v3791_v58  ;;  %v1146_v4 = vpop.f32.mrb[91].mxu1 }
 0x280   :  { %v1147_v42 = vadd.f32 %v1146_v4, %v3794_v59  ;;  %1708 = vmatprep.mubr.f32.mxu0 %v1346_v3 }
 0x281   :  { %1709 = vmatmul.mubr.f32.gmra.mrb[152].mxu0 %v1345_v28  ;;  %v1347_v41 = vmax.f32 %v1145_v34, 0.0 }
 0x282   :  { %v1348_v47 = vmax.f32 %v1147_v42, 0.0  ;;  %v1150_v57 = vpop.f32.mrb[92].mxu1 }
 0x283   :  { %v1151_v5 = vadd.f32 %v1150_v57, %v3791_v58  ;;  %v1152_v49 = vpop.f32.mrb[93].mxu1 }
 0x284   :  { %v1153_v2 = vadd.f32 %v1152_v49, %v3794_v59  ;;  %1713 = vmatprep.mubr.f32.mxu0 %v1348_v47 }
 0x285   :  { %1714 = vmatmul.mubr.f32.gmra.mrb[154].mxu0 %v1347_v41  ;;  %v1349_v11 = vmax.f32 %v1151_v5, 0.0 }
 0x286   :  { %v1350_v55 = vmax.f32 %v1153_v2, 0.0  ;;  %v1156_v48 = vpop.f32.mrb[94].mxu1 }
 0x287   :  { %v1157_v33 = vadd.f32 %v1156_v48, %v3791_v58  ;;  %v1158_v53 = vpop.f32.mrb[95].mxu1 }
 0x288   :  { %v1159_v8 = vadd.f32 %v1158_v53, %v3794_v59  ;;  %1718 = vmatprep.mubr.f32.mxu0 %v1350_v55 }
 0x289   :  { %1719 = vmatmul.mubr.f32.gmra.mrb[156].mxu0 %v1349_v11  ;;  %v1351_v40 = vmax.f32 %v1157_v33, 0.0 }
 0x28a   :  { %v1352_v52 = vmax.f32 %v1159_v8, 0.0  ;;  %v1162_v16 = vpop.f32.mrb[96].mxu1 }
 0x28b   :  { %v1163_v61 = vadd.f32 %v1162_v16, %v3791_v58  ;;  %v1164_v17 = vpop.f32.mrb[97].mxu1 }
 0x28c   :  { %v1165_v6 = vadd.f32 %v1164_v17, %v3794_v59  ;;  %1723 = vmatprep.mubr.f32.mxu0 %v1352_v52 }
 0x28d   :  { %1724 = vmatmul.mubr.f32.gmra.mrb[158].mxu0 %v1351_v40  ;;  %v1353_v22 = vmax.f32 %v1163_v61, 0.0 }
 0x28e   :  { %v1354_v54 = vmax.f32 %v1165_v6, 0.0  ;;  %v1168_v60 = vpop.f32.mrb[98].mxu1 }
 0x28f   :  { %v1169_v1 = vadd.f32 %v1168_v60, %v3791_v58  ;;  %v1170_v7 = vpop.f32.mrb[99].mxu1 }
 0x290   :  { %v1171_v37 = vadd.f32 %v1170_v7, %v3794_v59  ;;  %1728 = vmatprep.mubr.f32.mxu0 %v1354_v54 }
 0x291   :  { %1729 = vmatmul.mubr.f32.gmra.mrb[160].mxu0 %v1353_v22  ;;  %v1355_v39 = vmax.f32 %v1169_v1, 0.0 }
 0x292   :  { %v1356_v0 = vmax.f32 %v1171_v37, 0.0  ;;  %v1174_v15 = vpop.f32.mrb[100].mxu1 }
 0x293   :  { %v1175_v10 = vadd.f32 %v1174_v15, %v3791_v58  ;;  %v1176_v27 = vpop.f32.mrb[101].mxu1 }
 0x294   :  { %v1177_v9 = vadd.f32 %v1176_v27, %v3794_v59  ;;  %1733 = vmatprep.mubr.f32.mxu0 %v1356_v0 }
 0x295   :  { %1734 = vmatmul.mubr.f32.gmra.mrb[162].mxu0 %v1355_v39  ;;  %v1357_v14 = vmax.f32 %v1175_v10, 0.0 }
 0x296   :  { %v1358_v32 = vmax.f32 %v1177_v9, 0.0  ;;  %v1180_v13 = vpop.f32.mrb[102].mxu1 }
 0x297   :  { %v1181_v12 = vadd.f32 %v1180_v13, %v3791_v58  ;;  %v1182_v21 = vpop.f32.mrb[103].mxu1 }
 0x298   :  { %v1183_v45 = vadd.f32 %v1182_v21, %v3794_v59  ;;  %1738 = vmatprep.mubr.f32.mxu0 %v1358_v32 }
 0x299   :  { %1739 = vmatmul.mubr.f32.gmra.mrb[164].mxu0 %v1357_v14  ;;  %v1359_v20 = vmax.f32 %v1181_v12, 0.0 }
 0x29a   :  { %v1360_v19 = vmax.f32 %v1183_v45, 0.0  ;;  %v1186_v35 = vpop.f32.mrb[104].mxu1 }
 0x29b   :  { %v1187_v43 = vadd.f32 %v1186_v35, %v3791_v58  ;;  %v1188_v18 = vpop.f32.mrb[105].mxu1 }
 0x29c   :  { %v1189_v26 = vadd.f32 %v1188_v18, %v3794_v59  ;;  %1743 = vmatprep.mubr.f32.mxu0 %v1360_v19 }
 0x29d   :  { %1744 = vmatmul.mubr.f32.gmra.mrb[166].mxu0 %v1359_v20  ;;  %v1361_v51 = vmax.f32 %v1187_v43, 0.0  ;;  %v4002_v43 = vld [vmem:[%s4171_s6] ss:$0 sm:$0xff] }
 0x29e   :  { %v1362_v24 = vmax.f32 %v1189_v26, 0.0  ;;  %v1192_v46 = vpop.f32.mrb[106].mxu1 }
 0x29f   :  { %v1193_v25 = vadd.f32 %v1192_v46, %v3791_v58  ;;  %v1194_v44 = vpop.f32.mrb[107].mxu1 }
 0x2a0   :  { %v1195_v30 = vadd.f32 %v1194_v44, %v3794_v59  ;;  %1748 = vmatprep.mubr.f32.mxu0 %v1362_v24 }
 0x2a1   :  { %1749 = vmatmul.mubr.f32.gmra.mrb[168].mxu0 %v1361_v51  ;;  %v1363_v31 = vmax.f32 %v1193_v25, 0.0 }
 0x2a2   :  { %v1364_v56 = vmax.f32 %v1195_v30, 0.0  ;;  %v1198_v23 = vpop.f32.mrb[108].mxu1 }
 0x2a3   :  { %v1199_v29 = vadd.f32 %v1198_v23, %v3791_v58  ;;  %v1200_v50 = vpop.f32.mrb[109].mxu1 }
 0x2a4   :  { %v1201_v62 = vadd.f32 %v1200_v50, %v3794_v59  ;;  %v3976_v63 = vpop.f32.mrb[64].mxu0  ;;  %1753 = vmatprep.mubr.f32.mxu0 %v1364_v56 }
 0x2a5   :  { %v1492_v38 = vpop.f32.mrb[65].mxu0  ;;  %1754 = vmatmul.mubr.f32.gmra.mrb[170].mxu0 %v1363_v31  ;;  %v1365_v28 = vmax.f32 %v1199_v29, 0.0 }
 0x2a6   :  { %v1366_v3 = vmax.f32 %v1201_v62, 0.0  ;;  %v1204_v36 = vpop.f32.mrb[110].mxu1 }
 0x2a7   :  { %v1205_v34 = vadd.f32 %v1204_v36, %v3791_v58  ;;  %v1206_v4 = vpop.f32.mrb[111].mxu1 }
 0x2a8   :  { %v1207_v42 = vadd.f32 %v1206_v4, %v3794_v59  ;;  %v3980_v47 = vpop.f32.mrb[66].mxu0  ;;  %1758 = vmatprep.mubr.f32.mxu0 %v1366_v3 }
 0x2a9   :  { %v1497_v57 = vpop.f32.mrb[67].mxu0  ;;  %1759 = vmatmul.mubr.f32.gmra.mrb[172].mxu0 %v1365_v28  ;;  %v1367_v49 = vmax.f32 %v1205_v34, 0.0 }
 0x2aa   :  { %v1368_v41 = vmax.f32 %v1207_v42, 0.0  ;;  %v1210_v5 = vpop.f32.mrb[112].mxu1 }
 0x2ab   :  { %v1211_v2 = vadd.f32 %v1210_v5, %v3791_v58  ;;  %v1212_v55 = vpop.f32.mrb[113].mxu1 }
 0x2ac   :  { %v1213_v48 = vadd.f32 %v1212_v55, %v3794_v59  ;;  %v3984_v11 = vpop.f32.mrb[68].mxu0  ;;  %1763 = vmatprep.mubr.f32.mxu0 %v1368_v41 }
 0x2ad   :  { %v1502_v33 = vpop.f32.mrb[69].mxu0  ;;  %1764 = vmatmul.mubr.f32.gmra.mrb[174].mxu0 %v1367_v49  ;;  %v1369_v52 = vmax.f32 %v1211_v2, 0.0 }
 0x2ae   :  { %v1370_v53 = vmax.f32 %v1213_v48, 0.0  ;;  %v1216_v8 = vpop.f32.mrb[114].mxu1 }
 0x2af   :  { %v1217_v16 = vadd.f32 %v1216_v8, %v3791_v58  ;;  %v1218_v40 = vpop.f32.mrb[115].mxu1  ;;  %v1491_v8 = vadd.f32 %v4002_v43, %v3976_v63 }
 0x2b0   :  { %v1219_v61 = vadd.f32 %v1218_v40, %v3794_v59  ;;  %v3988_v17 = vpop.f32.mrb[70].mxu0  ;;  %1768 = vmatprep.mubr.f32.mxu0 %v1370_v53 }
 0x2b1   :  { %v1507_v6 = vpop.f32.mrb[71].mxu0  ;;  %1769 = vmatmul.mubr.f32.gmra.mrb[176].mxu0 %v1369_v52  ;;  %v1371_v22 = vmax.f32 %v1217_v16, 0.0 }
 0x2b2   :  { %v1372_v54 = vmax.f32 %v1219_v61, 0.0  ;;  %v1222_v60 = vpop.f32.mrb[116].mxu1 }
 0x2b3   :  { %v1223_v1 = vadd.f32 %v1222_v60, %v3791_v58  ;;  %v1224_v7 = vpop.f32.mrb[117].mxu1 }
 0x2b4   :  { %v1225_v37 = vadd.f32 %v1224_v7, %v3794_v59  ;;  %v3992_v0 = vpop.f32.mrb[72].mxu0  ;;  %1773 = vmatprep.mubr.f32.mxu0 %v1372_v54  ;;  %v1496_v54 = vadd.f32 %v4002_v43, %v3980_v47 }
 0x2b5   :  { %v1512_v15 = vpop.f32.mrb[73].mxu0  ;;  %1774 = vmatmul.mubr.f32.gmra.mrb[178].mxu0 %v1371_v22  ;;  %v1373_v27 = vmax.f32 %v1223_v1, 0.0  ;;  %v1501_v1 = vadd.f32 %v4002_v43, %v3984_v11 }
 0x2b6   :  { %v1374_v39 = vmax.f32 %v1225_v37, 0.0  ;;  %v1228_v10 = vpop.f32.mrb[118].mxu1  ;;  %v1810_v37 = vmax.f32 %v1496_v54, 0.0  ;;  %v1506_v15 = vadd.f32 %v4002_v43, %v3988_v17 }
 0x2b7   :  { %v1229_v9 = vadd.f32 %v1228_v10, %v3791_v58  ;;  %v1230_v32 = vpop.f32.mrb[119].mxu1  ;;  %v1811_v47 = vmax.f32 %v1501_v1, 0.0  ;;  %v1511_v10 = vadd.f32 %v4002_v43, %v3992_v0 }
 0x2b8   :  { %v1231_v13 = vadd.f32 %v1230_v32, %v3794_v59  ;;  %v3996_v14 = vpop.f32.mrb[74].mxu0  ;;  %1778 = vmatprep.mubr.f32.mxu0 %v1374_v39  ;;  %v1812_v32 = vmax.f32 %v1506_v15, 0.0 }
 0x2b9   :  { %v1517_v12 = vpop.f32.mrb[75].mxu0  ;;  %1779 = vmatmul.mubr.f32.gmra.mrb[180].mxu0 %v1373_v27  ;;  %v1375_v19 = vmax.f32 %v1229_v9, 0.0 }
 0x2ba   :  { %v1376_v21 = vmax.f32 %v1231_v13, 0.0  ;;  %v1234_v45 = vpop.f32.mrb[120].mxu1  ;;  %v1516_v13 = vadd.f32 %v4002_v43, %v3996_v14 }
 0x2bb   :  { %v1235_v35 = vadd.f32 %v1234_v45, %v3791_v58  ;;  %v1236_v20 = vpop.f32.mrb[121].mxu1 }
 0x2bc   :  { %v1237_v18 = vadd.f32 %v1236_v20, %v3794_v59  ;;  %v1520_v26 = vpop.f32.mrb[76].mxu0  ;;  %1783 = vmatprep.mubr.f32.mxu0 %v1376_v21  ;;  %v1813_v21 = vmax.f32 %v1511_v10, 0.0  ;;  %v1814_v0 = vmax.f32 %v1516_v13, 0.0 }
 0x2bd   :  { %v1521_v24 = vadd.f32 %v4002_v43, %v1520_v26  ;;  %v1522_v46 = vpop.f32.mrb[77].mxu0  ;;  %1784 = vmatmul.mubr.f32.gmra.mrb[182].mxu0 %v1375_v19  ;;  %v1377_v44 = vmax.f32 %v1235_v35, 0.0 }
 0x2be   :  { %v1378_v51 = vmax.f32 %v1237_v18, 0.0  ;;  %v1240_v25 = vpop.f32.mrb[122].mxu1 }
 0x2bf   :  { %v1815_v30 = vmax.f32 %v1521_v24, 0.0  ;;  %v1241_v56 = vadd.f32 %v1240_v25, %v3791_v58  ;;  %v1242_v23 = vpop.f32.mrb[123].mxu1 }
 0x2c0   :  { %v1243_v31 = vadd.f32 %v1242_v23, %v3794_v59  ;;  %v1525_v29 = vpop.f32.mrb[78].mxu0  ;;  %1788 = vmatprep.mubr.f32.mxu0 %v1378_v51 }
 0x2c1   :  { %v1526_v50 = vadd.f32 %v4002_v43, %v1525_v29  ;;  %v1527_v62 = vpop.f32.mrb[79].mxu0  ;;  %1789 = vmatmul.mubr.f32.gmra.mrb[184].mxu0 %v1377_v44  ;;  %2722 = vmatprep.mubr.f32.mxu1 %v1815_v30  ;;  %v1379_v36 = vmax.f32 %v1241_v56, 0.0 }
 0x2c2   :  { %v1380_v38 = vmax.f32 %v1243_v31, 0.0  ;;  %v1246_v3 = vpop.f32.mrb[124].mxu1 }
 0x2c3   :  { %v1816_v28 = vmax.f32 %v1526_v50, 0.0  ;;  %v1247_v34 = vadd.f32 %v1246_v3, %v3791_v58  ;;  %v1248_v4 = vpop.f32.mrb[125].mxu1 }
 0x2c4   :  { %v1249_v42 = vadd.f32 %v1248_v4, %v3794_v59  ;;  %v1530_v57 = vpop.f32.mrb[80].mxu0  ;;  %1793 = vmatprep.mubr.f32.mxu0 %v1380_v38 }
 0x2c5   :  { %v1531_v41 = vadd.f32 %v4002_v43, %v1530_v57  ;;  %v1532_v5 = vpop.f32.mrb[81].mxu0  ;;  %1794 = vmatmul.mubr.f32.gmra.mrb[186].mxu0 %v1379_v36  ;;  %2723 = vmatmul.mubr.f32.vlgmr.msra.gmra.mrb[128].mxu1 %v1816_v28  ;;  %v1381_v55 = vmax.f32 %v1247_v34, 0.0 }
 0x2c6   :  { %v1382_v49 = vmax.f32 %v1249_v42, 0.0  ;;  %v1252_v2 = vpop.f32.mrb[126].mxu1 }
 0x2c7   :  { %v1817_v48 = vmax.f32 %v1531_v41, 0.0  ;;  %v1253_v33 = vadd.f32 %v1252_v2, %v3791_v58  ;;  %v1254_v53 = vpop.f32.mrb[127].mxu1  ;;  %v1809_v58 = vmax.f32 %v1491_v8, 0.0 }
 0x2c8   :  { %v1255_v52 = vadd.f32 %v1254_v53, %v3794_v59  ;;  %v1535_v16 = vpop.f32.mrb[82].mxu0  ;;  %1798 = vmatprep.mubr.f32.mxu0 %v1382_v49 }
 0x2c9   :  { %v1536_v40 = vadd.f32 %v4002_v43, %v1535_v16  ;;  %v1537_v61 = vpop.f32.mrb[83].mxu0  ;;  %1799 = vmatmul.mubr.f32.gmra.mrb[188].mxu0 %v1381_v55  ;;  %2725 = vmatprep.mubr.f32.mxu1 %v1817_v48  ;;  %v1383_v60 = vmax.f32 %v1253_v33, 0.0 }
 0x2ca   :  { %v1384_v6 = vmax.f32 %v1255_v52, 0.0 }
 0x2cb   :  { %v1818_v22 = vmax.f32 %v1536_v40, 0.0 }
 0x2cc   :  { %v1540_v63 = vpop.f32.mrb[84].mxu0  ;;  %1803 = vmatprep.mubr.f32.mxu0 %v1384_v6 }
 0x2cd   :  { %v1541_v59 = vadd.f32 %v4002_v43, %v1540_v63  ;;  %v1542_v7 = vpop.f32.mrb[85].mxu0  ;;  %1804 = vmatmul.mubr.f32.gmra.mrb[190].mxu0 %v1383_v60  ;;  %2726 = vmatmul.mubr.f32.gmra.mrb[130].mxu1 %v1818_v22 }
 0x2ce   :  { %2713 = vmatprep.mubr.f32.mxu0 %v1809_v58 }
 0x2cf   :  { %v1819_v39 = vmax.f32 %v1541_v59, 0.0 }
 0x2d0   :  { %v1545_v27 = vpop.f32.mrb[86].mxu0 }
 0x2d1   :  { %v1546_v11 = vadd.f32 %v4002_v43, %v1545_v27  ;;  %v1547_v9 = vpop.f32.mrb[87].mxu0  ;;  %2714 = vmatmul.mubr.f32.vlgmr.msra.gmra.mrb[192].mxu0 %v1810_v37  ;;  %2728 = vmatprep.mubr.f32.mxu1 %v1819_v39 }
 0x2d2   :  { %2716 = vmatprep.mubr.f32.mxu0 %v1811_v47 }
 0x2d3   :  { %v1820_v12 = vmax.f32 %v1546_v11, 0.0 }
 0x2d4   :  { %v1550_v45 = vpop.f32.mrb[88].mxu0 }
 0x2d5   :  { %v1551_v17 = vadd.f32 %v4002_v43, %v1550_v45  ;;  %v1552_v19 = vpop.f32.mrb[89].mxu0  ;;  %2717 = vmatmul.mubr.f32.gmra.mrb[194].mxu0 %v1812_v32  ;;  %2729 = vmatmul.mubr.f32.gmra.mrb[132].mxu1 %v1820_v12 }
 0x2d6   :  { %2719 = vmatprep.mubr.f32.mxu0 %v1813_v21 }
 0x2d7   :  { %v1821_v35 = vmax.f32 %v1551_v17, 0.0 }
 0x2d8   :  { %v1555_v20 = vpop.f32.mrb[90].mxu0 }
 0x2d9   :  { %v1556_v18 = vadd.f32 %v4002_v43, %v1555_v20  ;;  %v1557_v26 = vpop.f32.mrb[91].mxu0  ;;  %2720 = vmatmul.mubr.f32.gmra.mrb[196].mxu0 %v1814_v0  ;;  %2731 = vmatprep.mubr.f32.mxu1 %v1821_v35 }
 0x2db   :  { %v1822_v24 = vmax.f32 %v1556_v18, 0.0 }
 0x2dc   :  { %v1560_v46 = vpop.f32.mrb[92].mxu0 }
 0x2dd   :  { %v1561_v14 = vadd.f32 %v4002_v43, %v1560_v46  ;;  %v1562_v51 = vpop.f32.mrb[93].mxu0  ;;  %2732 = vmatmul.mubr.f32.gmra.mrb[134].mxu1 %v1822_v24 }
 0x2df   :  { %v1823_v25 = vmax.f32 %v1561_v14, 0.0 }
 0x2e0   :  { %v1565_v44 = vpop.f32.mrb[94].mxu0 }
 0x2e1   :  { %v1566_v30 = vadd.f32 %v4002_v43, %v1565_v44  ;;  %v1567_v56 = vpop.f32.mrb[95].mxu0  ;;  %2734 = vmatprep.mubr.f32.mxu1 %v1823_v25 }
 0x2e3   :  { %v1824_v23 = vmax.f32 %v1566_v30, 0.0 }
 0x2e4   :  { %v1570_v31 = vpop.f32.mrb[96].mxu0 }
 0x2e5   :  { %v1571_v29 = vadd.f32 %v4002_v43, %v1570_v31  ;;  %v1572_v50 = vpop.f32.mrb[97].mxu0  ;;  %2735 = vmatmul.mubr.f32.gmra.mrb[136].mxu1 %v1824_v23 }
 0x2e7   :  { %v1825_v62 = vmax.f32 %v1571_v29, 0.0 }
 0x2e8   :  { %v1575_v38 = vpop.f32.mrb[98].mxu0 }
 0x2e9   :  { %v1576_v3 = vadd.f32 %v4002_v43, %v1575_v38  ;;  %v1577_v36 = vpop.f32.mrb[99].mxu0  ;;  %2737 = vmatprep.mubr.f32.mxu1 %v1825_v62 }
 0x2eb   :  { %v1826_v28 = vmax.f32 %v1576_v3, 0.0 }
 0x2ec   :  { %v1580_v34 = vpop.f32.mrb[100].mxu0 }
 0x2ed   :  { %v1581_v4 = vadd.f32 %v4002_v43, %v1580_v34  ;;  %v1582_v42 = vpop.f32.mrb[101].mxu0  ;;  %2738 = vmatmul.mubr.f32.gmra.mrb[138].mxu1 %v1826_v28 }
 0x2ef   :  { %v1827_v57 = vmax.f32 %v1581_v4, 0.0 }
 0x2f0   :  { %v1585_v41 = vpop.f32.mrb[102].mxu0 }
 0x2f1   :  { %v1586_v5 = vadd.f32 %v4002_v43, %v1585_v41  ;;  %v1587_v49 = vpop.f32.mrb[103].mxu0  ;;  %2740 = vmatprep.mubr.f32.mxu1 %v1827_v57 }
 0x2f3   :  { %v1828_v2 = vmax.f32 %v1586_v5, 0.0 }
 0x2f4   :  { %v1590_v55 = vpop.f32.mrb[104].mxu0 }
 0x2f5   :  { %v1591_v48 = vadd.f32 %v4002_v43, %v1590_v55  ;;  %v1592_v33 = vpop.f32.mrb[105].mxu0  ;;  %2741 = vmatmul.mubr.f32.gmra.mrb[140].mxu1 %v1828_v2 }
 0x2f7   :  { %v1829_v53 = vmax.f32 %v1591_v48, 0.0 }
 0x2f8   :  { %v1595_v8 = vpop.f32.mrb[106].mxu0 }
 0x2f9   :  { %v1596_v52 = vadd.f32 %v4002_v43, %v1595_v8  ;;  %v1597_v16 = vpop.f32.mrb[107].mxu0  ;;  %2743 = vmatprep.mubr.f32.mxu1 %v1829_v53 }
 0x2fb   :  { %v1830_v40 = vmax.f32 %v1596_v52, 0.0 }
 0x2fc   :  { %v1600_v61 = vpop.f32.mrb[108].mxu0 }
 0x2fd   :  { %v1601_v6 = vadd.f32 %v4002_v43, %v1600_v61  ;;  %v1602_v54 = vpop.f32.mrb[109].mxu0  ;;  %2744 = vmatmul.mubr.f32.gmra.mrb[142].mxu1 %v1830_v40 }
 0x2ff   :  { %v1831_v60 = vmax.f32 %v1601_v6, 0.0 }
 0x300   :  { %v1605_v22 = vpop.f32.mrb[110].mxu0 }
 0x301   :  { %v1606_v58 = vadd.f32 %v4002_v43, %v1605_v22  ;;  %v1607_v1 = vpop.f32.mrb[111].mxu0  ;;  %2746 = vmatprep.mubr.f32.mxu1 %v1831_v60 }
 0x303   :  { %v1832_v63 = vmax.f32 %v1606_v58, 0.0 }
 0x304   :  { %v1610_v59 = vpop.f32.mrb[112].mxu0 }
 0x305   :  { %v1611_v7 = vadd.f32 %v4002_v43, %v1610_v59  ;;  %v1612_v37 = vpop.f32.mrb[113].mxu0  ;;  %2747 = vmatmul.mubr.f32.gmra.mrb[144].mxu1 %v1832_v63 }
 0x307   :  { %v1833_v15 = vmax.f32 %v1611_v7, 0.0 }
 0x308   :  { %v1615_v39 = vpop.f32.mrb[114].mxu0 }
 0x309   :  { %v1616_v47 = vadd.f32 %v4002_v43, %v1615_v39  ;;  %v1617_v10 = vpop.f32.mrb[115].mxu0  ;;  %2749 = vmatprep.mubr.f32.mxu1 %v1833_v15 }
 0x30b   :  { %v1834_v27 = vmax.f32 %v1616_v47, 0.0 }
 0x30c   :  { %v1620_v11 = vpop.f32.mrb[116].mxu0 }
 0x30d   :  { %v1621_v9 = vadd.f32 %v4002_v43, %v1620_v11  ;;  %v1622_v32 = vpop.f32.mrb[117].mxu0  ;;  %2750 = vmatmul.mubr.f32.gmra.mrb[146].mxu1 %v1834_v27 }
 0x30f   :  { %v1835_v13 = vmax.f32 %v1621_v9, 0.0 }
 0x310   :  { %v1625_v12 = vpop.f32.mrb[118].mxu0 }
 0x311   :  { %v1626_v21 = vadd.f32 %v4002_v43, %v1625_v12  ;;  %v1627_v45 = vpop.f32.mrb[119].mxu0  ;;  %2752 = vmatprep.mubr.f32.mxu1 %v1835_v13 }
 0x313   :  { %v1836_v17 = vmax.f32 %v1626_v21, 0.0 }
 0x314   :  { %v1630_v19 = vpop.f32.mrb[120].mxu0 }
 0x315   :  { %v1631_v0 = vadd.f32 %v4002_v43, %v1630_v19  ;;  %v1632_v35 = vpop.f32.mrb[121].mxu0  ;;  %2753 = vmatmul.mubr.f32.gmra.mrb[148].mxu1 %v1836_v17 }
 0x317   :  { %v1837_v20 = vmax.f32 %v1631_v0, 0.0 }
 0x318   :  { %v1635_v18 = vpop.f32.mrb[122].mxu0 }
 0x319   :  { %v1636_v26 = vadd.f32 %v4002_v43, %v1635_v18  ;;  %v1637_v24 = vpop.f32.mrb[123].mxu0  ;;  %2755 = vmatprep.mubr.f32.mxu1 %v1837_v20 }
 0x31b   :  { %v1838_v46 = vmax.f32 %v1636_v26, 0.0 }
 0x31c   :  { %v1640_v14 = vpop.f32.mrb[124].mxu0 }
 0x31d   :  { %v1641_v51 = vadd.f32 %v4002_v43, %v1640_v14  ;;  %v1642_v25 = vpop.f32.mrb[125].mxu0  ;;  %2756 = vmatmul.mubr.f32.gmra.mrb[150].mxu1 %v1838_v46 }
 0x31f   :  { %v1839_v44 = vmax.f32 %v1641_v51, 0.0 }
 0x320   :  { %v1645_v30 = vpop.f32.mrb[126].mxu0 }
 0x321   :  { %v1646_v56 = vadd.f32 %v4002_v43, %v1645_v30  ;;  %v1647_v23 = vpop.f32.mrb[127].mxu0  ;;  %2758 = vmatprep.mubr.f32.mxu1 %v1839_v44 }
 0x323   :  { %v1840_v31 = vmax.f32 %v1646_v56, 0.0 }
 0x324   :  { %v1650_v29 = vpop.f32.mrb[128].mxu0 }
 0x325   :  { %v1651_v50 = vadd.f32 %v4002_v43, %v1650_v29  ;;  %v1652_v62 = vpop.f32.mrb[129].mxu0  ;;  %2759 = vmatmul.mubr.f32.gmra.mrb[152].mxu1 %v1840_v31 }
 0x327   :  { %v1841_v38 = vmax.f32 %v1651_v50, 0.0 }
 0x328   :  { %v1655_v3 = vpop.f32.mrb[130].mxu0 }
 0x329   :  { %v1656_v36 = vadd.f32 %v4002_v43, %v1655_v3  ;;  %v1657_v28 = vpop.f32.mrb[131].mxu0  ;;  %2761 = vmatprep.mubr.f32.mxu1 %v1841_v38 }
 0x32b   :  { %v1842_v34 = vmax.f32 %v1656_v36, 0.0 }
 0x32c   :  { %v1660_v4 = vpop.f32.mrb[132].mxu0 }
 0x32d   :  { %v1661_v42 = vadd.f32 %v4002_v43, %v1660_v4  ;;  %v1662_v57 = vpop.f32.mrb[133].mxu0  ;;  %2762 = vmatmul.mubr.f32.gmra.mrb[154].mxu1 %v1842_v34 }
 0x32f   :  { %v1843_v41 = vmax.f32 %v1661_v42, 0.0 }
 0x330   :  { %v1665_v5 = vpop.f32.mrb[134].mxu0 }
 0x331   :  { %v1666_v49 = vadd.f32 %v4002_v43, %v1665_v5  ;;  %v1667_v2 = vpop.f32.mrb[135].mxu0  ;;  %2764 = vmatprep.mubr.f32.mxu1 %v1843_v41 }
 0x333   :  { %v1844_v55 = vmax.f32 %v1666_v49, 0.0 }
 0x334   :  { %v1670_v48 = vpop.f32.mrb[136].mxu0 }
 0x335   :  { %v1671_v33 = vadd.f32 %v4002_v43, %v1670_v48  ;;  %v1672_v53 = vpop.f32.mrb[137].mxu0  ;;  %2765 = vmatmul.mubr.f32.gmra.mrb[156].mxu1 %v1844_v55 }
 0x337   :  { %v1845_v8 = vmax.f32 %v1671_v33, 0.0 }
 0x338   :  { %v1675_v52 = vpop.f32.mrb[138].mxu0 }
 0x339   :  { %v1676_v16 = vadd.f32 %v4002_v43, %v1675_v52  ;;  %v1677_v40 = vpop.f32.mrb[139].mxu0  ;;  %2767 = vmatprep.mubr.f32.mxu1 %v1845_v8 }
 0x33b   :  { %v1846_v61 = vmax.f32 %v1676_v16, 0.0 }
 0x33c   :  { %v1680_v6 = vpop.f32.mrb[140].mxu0 }
 0x33d   :  { %v1681_v54 = vadd.f32 %v4002_v43, %v1680_v6  ;;  %v1682_v60 = vpop.f32.mrb[141].mxu0  ;;  %2768 = vmatmul.mubr.f32.gmra.mrb[158].mxu1 %v1846_v61 }
 0x33f   :  { %v1847_v22 = vmax.f32 %v1681_v54, 0.0 }
 0x340   :  { %v1685_v58 = vpop.f32.mrb[142].mxu0 }
 0x341   :  { %v1686_v1 = vadd.f32 %v4002_v43, %v1685_v58  ;;  %v1687_v63 = vpop.f32.mrb[143].mxu0  ;;  %2770 = vmatprep.mubr.f32.mxu1 %v1847_v22 }
 0x343   :  { %v1848_v59 = vmax.f32 %v1686_v1, 0.0 }
 0x344   :  { %v1690_v7 = vpop.f32.mrb[144].mxu0 }
 0x345   :  { %v1691_v37 = vadd.f32 %v4002_v43, %v1690_v7  ;;  %v1692_v15 = vpop.f32.mrb[145].mxu0  ;;  %2771 = vmatmul.mubr.f32.gmra.mrb[160].mxu1 %v1848_v59 }
 0x347   :  { %v1849_v39 = vmax.f32 %v1691_v37, 0.0 }
 0x348   :  { %v1695_v47 = vpop.f32.mrb[146].mxu0 }
 0x349   :  { %v1696_v10 = vadd.f32 %v4002_v43, %v1695_v47  ;;  %v1697_v27 = vpop.f32.mrb[147].mxu0  ;;  %2773 = vmatprep.mubr.f32.mxu1 %v1849_v39 }
 0x34b   :  { %v1850_v11 = vmax.f32 %v1696_v10, 0.0 }
 0x34c   :  { %v1700_v9 = vpop.f32.mrb[148].mxu0 }
 0x34d   :  { %v1701_v32 = vadd.f32 %v4002_v43, %v1700_v9  ;;  %v1702_v13 = vpop.f32.mrb[149].mxu0  ;;  %2774 = vmatmul.mubr.f32.gmra.mrb[162].mxu1 %v1850_v11 }
 0x34f   :  { %v1851_v12 = vmax.f32 %v1701_v32, 0.0 }
 0x350   :  { %v1705_v21 = vpop.f32.mrb[150].mxu0 }
 0x351   :  { %v1706_v45 = vadd.f32 %v4002_v43, %v1705_v21  ;;  %v1707_v17 = vpop.f32.mrb[151].mxu0  ;;  %2776 = vmatprep.mubr.f32.mxu1 %v1851_v12 }
 0x353   :  { %v1852_v19 = vmax.f32 %v1706_v45, 0.0 }
 0x354   :  { %v1710_v0 = vpop.f32.mrb[152].mxu0 }
 0x355   :  { %v1711_v35 = vadd.f32 %v4002_v43, %v1710_v0  ;;  %v1712_v20 = vpop.f32.mrb[153].mxu0  ;;  %2777 = vmatmul.mubr.f32.gmra.mrb[164].mxu1 %v1852_v19 }
 0x357   :  { %v1853_v18 = vmax.f32 %v1711_v35, 0.0 }
 0x358   :  { %v1715_v26 = vpop.f32.mrb[154].mxu0 }
 0x359   :  { %v1716_v24 = vadd.f32 %v4002_v43, %v1715_v26  ;;  %v1717_v46 = vpop.f32.mrb[155].mxu0  ;;  %2779 = vmatprep.mubr.f32.mxu1 %v1853_v18  ;;  %v4081_v26 = vld [vmem:[%s4173_s8] ss:$0 sm:$0xff]  ;;  %s3004_s8 = smov [#allocation5]  }
 0x35a   :  { %s2350_s0 = sshll.u32 %s3004_s8, 4  ;;  %s2351_s0 = int_to_ptr.vmem [resolvable:$true] %s2350_s0 }
 0x35b   :  { %v1854_v14 = vmax.f32 %v1716_v24, 0.0  ;;  %s2973_s17 = scalar_lea.vmem %s2351_s0, 8192  ;;  %p2978_p9 = scmp.lt.s32.totalorder %s2351_s0, %s2351_s0 }
 0x35c   :  { %v1720_v51 = vpop.f32.mrb[156].mxu0  ;;  %p2974_p8 = scmp.ne.s32.totalorder %s2351_s0, %s2973_s17  ;;  %p2979_p10 = scmp.lt.s32.totalorder %s2973_s17, %s2973_s17 }
 0x35d   :  { %v1721_v25 = vadd.f32 %v4002_v43, %v1720_v51  ;;  %v1722_v44 = vpop.f32.mrb[157].mxu0  ;;  %2780 = vmatmul.mubr.f32.gmra.mrb[166].mxu1 %v1854_v14 }
 0x35e   :  { %p2980_p11 = por %p2979_p10, %p2978_p9 }
 0x35f   :  { %v1855_v30 = vmax.f32 %v1721_v25, 0.0 }
 0x360   :  { %v1725_v56 = vpop.f32.mrb[158].mxu0  ;;  %p2981_p12 = pnand %p2980_p11, %p2974_p8 }
 0x361   :  { %v1726_v23 = vadd.f32 %v4002_v43, %v1725_v56  ;;  %v1727_v31 = vpop.f32.mrb[159].mxu0  ;;  %2782 = vmatprep.mubr.f32.mxu1 %v1855_v30 }
 0x363   :  { %v1856_v29 = vmax.f32 %v1726_v23, 0.0 }
 0x364   :  { %v1730_v50 = vpop.f32.mrb[160].mxu0 }
 0x365   :  { %v1731_v62 = vadd.f32 %v4002_v43, %v1730_v50  ;;  %v1732_v38 = vpop.f32.mrb[161].mxu0  ;;  %2783 = vmatmul.mubr.f32.gmra.mrb[168].mxu1 %v1856_v29 }
 0x367   :  { %v1857_v3 = vmax.f32 %v1731_v62, 0.0 }
 0x368   :  { %v1735_v36 = vpop.f32.mrb[162].mxu0 }
 0x369   :  { %v1736_v28 = vadd.f32 %v4002_v43, %v1735_v36  ;;  %v1737_v34 = vpop.f32.mrb[163].mxu0  ;;  %2785 = vmatprep.mubr.f32.mxu1 %v1857_v3 }
 0x36b   :  { %v1858_v4 = vmax.f32 %v1736_v28, 0.0 }
 0x36c   :  { %v1740_v42 = vpop.f32.mrb[164].mxu0 }
 0x36d   :  { %v1741_v57 = vadd.f32 %v4002_v43, %v1740_v42  ;;  %v1742_v41 = vpop.f32.mrb[165].mxu0  ;;  %2786 = vmatmul.mubr.f32.gmra.mrb[170].mxu1 %v1858_v4 }
 0x36f   :  { %v1859_v5 = vmax.f32 %v1741_v57, 0.0 }
 0x370   :  { %v1745_v49 = vpop.f32.mrb[166].mxu0 }
 0x371   :  { %v1746_v2 = vadd.f32 %v4002_v43, %v1745_v49  ;;  %v1747_v55 = vpop.f32.mrb[167].mxu0  ;;  %2788 = vmatprep.mubr.f32.mxu1 %v1859_v5 }
 0x373   :  { %v1860_v48 = vmax.f32 %v1746_v2, 0.0 }
 0x374   :  { %v1750_v33 = vpop.f32.mrb[168].mxu0 }
 0x375   :  { %v1751_v53 = vadd.f32 %v4002_v43, %v1750_v33  ;;  %v1752_v8 = vpop.f32.mrb[169].mxu0  ;;  %2789 = vmatmul.mubr.f32.gmra.mrb[172].mxu1 %v1860_v48 }
 0x377   :  { %v1861_v52 = vmax.f32 %v1751_v53, 0.0 }
 0x378   :  { %v1755_v16 = vpop.f32.mrb[170].mxu0 }
 0x379   :  { %v1756_v40 = vadd.f32 %v4002_v43, %v1755_v16  ;;  %v1757_v61 = vpop.f32.mrb[171].mxu0  ;;  %2791 = vmatprep.mubr.f32.mxu1 %v1861_v52 }
 0x37b   :  { %v1862_v6 = vmax.f32 %v1756_v40, 0.0 }
 0x37c   :  { %v1760_v54 = vpop.f32.mrb[172].mxu0 }
 0x37d   :  { %v1761_v60 = vadd.f32 %v4002_v43, %v1760_v54  ;;  %v1762_v22 = vpop.f32.mrb[173].mxu0  ;;  %2792 = vmatmul.mubr.f32.gmra.mrb[174].mxu1 %v1862_v6 }
 0x37f   :  { %v1863_v58 = vmax.f32 %v1761_v60, 0.0 }
 0x380   :  { %v1765_v1 = vpop.f32.mrb[174].mxu0 }
 0x381   :  { %v1766_v63 = vadd.f32 %v4002_v43, %v1765_v1  ;;  %v1767_v59 = vpop.f32.mrb[175].mxu0  ;;  %2794 = vmatprep.mubr.f32.mxu1 %v1863_v58 }
 0x383   :  { %v1864_v7 = vmax.f32 %v1766_v63, 0.0 }
 0x384   :  { %v1770_v37 = vpop.f32.mrb[176].mxu0 }
 0x385   :  { %v1771_v15 = vadd.f32 %v4002_v43, %v1770_v37  ;;  %v1772_v39 = vpop.f32.mrb[177].mxu0  ;;  %2795 = vmatmul.mubr.f32.gmra.mrb[176].mxu1 %v1864_v7 }
 0x387   :  { %v1865_v47 = vmax.f32 %v1771_v15, 0.0 }
 0x388   :  { %v1775_v10 = vpop.f32.mrb[178].mxu0 }
 0x389   :  { %v1776_v27 = vadd.f32 %v4002_v43, %v1775_v10  ;;  %v1777_v11 = vpop.f32.mrb[179].mxu0  ;;  %2797 = vmatprep.mubr.f32.mxu1 %v1865_v47 }
 0x38b   :  { %v1866_v9 = vmax.f32 %v1776_v27, 0.0 }
 0x38c   :  { %v1780_v32 = vpop.f32.mrb[180].mxu0 }
 0x38d   :  { %v1781_v13 = vadd.f32 %v4002_v43, %v1780_v32  ;;  %v1782_v12 = vpop.f32.mrb[181].mxu0  ;;  %2798 = vmatmul.mubr.f32.gmra.mrb[178].mxu1 %v1866_v9 }
 0x38f   :  { %v1867_v21 = vmax.f32 %v1781_v13, 0.0 }
 0x390   :  { %v1785_v45 = vpop.f32.mrb[182].mxu0 }
 0x391   :  { %v1786_v17 = vadd.f32 %v4002_v43, %v1785_v45  ;;  %v1787_v19 = vpop.f32.mrb[183].mxu0  ;;  %2800 = vmatprep.mubr.f32.mxu1 %v1867_v21 }
 0x393   :  { %v1868_v0 = vmax.f32 %v1786_v17, 0.0 }
 0x394   :  { %v1790_v35 = vpop.f32.mrb[184].mxu0 }
 0x395   :  { %v1791_v20 = vadd.f32 %v4002_v43, %v1790_v35  ;;  %v1792_v18 = vpop.f32.mrb[185].mxu0  ;;  %2801 = vmatmul.mubr.f32.gmra.mrb[180].mxu1 %v1868_v0 }
 0x397   :  { %v1869_v24 = vmax.f32 %v1791_v20, 0.0 }
 0x398   :  { %v1795_v46 = vpop.f32.mrb[186].mxu0  ;;  %v2724_v14 = vpop.f32.mrb[128].mxu1 }
 0x399   :  { %v1796_v51 = vadd.f32 %v4002_v43, %v1795_v46  ;;  %v1998_v25 = vadd.f32 %v2724_v14, %v4081_v26  ;;  %v1797_v44 = vpop.f32.mrb[187].mxu0  ;;  %v1992_v30 = vpop.f32.mrb[129].mxu1  ;;  %2803 = vmatprep.mubr.f32.mxu1 %v1869_v24 }
 0x39a   :  { %v1993_v56 = vadd.f32 %v4081_v26, %v1992_v30 }
 0x39b   :  { %v1870_v23 = vmax.f32 %v1796_v51, 0.0  ;;  %2288 = vst [vmem:[#allocation5 + $0x38] sm:$0xff] %v1998_v25 }
 0x39c   :  { %2287 = vst [vmem:[#allocation5 + $0x30] sm:$0xff] %v1993_v56  ;;  %v1800_v31 = vpop.f32.mrb[188].mxu0 }
 0x39d   :  { %v1801_v29 = vadd.f32 %v4002_v43, %v1800_v31  ;;  %v1802_v50 = vpop.f32.mrb[189].mxu0  ;;  %2804 = vmatmul.mubr.f32.gmra.mrb[182].mxu1 %v1870_v23 }
 0x39f   :  { %v1871_v62 = vmax.f32 %v1801_v29, 0.0 }
 0x3a0   :  { %v1805_v38 = vpop.f32.mrb[190].mxu0  ;;  %v2727_v3 = vpop.f32.mrb[130].mxu1 }
 0x3a1   :  { %v1806_v36 = vadd.f32 %v4002_v43, %v1805_v38  ;;  %v2008_v28 = vadd.f32 %v2727_v3, %v4081_v26  ;;  %v1807_v34 = vpop.f32.mrb[191].mxu0  ;;  %v2002_v4 = vpop.f32.mrb[131].mxu1  ;;  %2806 = vmatprep.mubr.f32.mxu1 %v1871_v62 }
 0x3a2   :  { %v2003_v42 = vadd.f32 %v4081_v26, %v2002_v4 }
 0x3a3   :  { %v1872_v57 = vmax.f32 %v1806_v36, 0.0  ;;  %2290 = vst [vmem:[#allocation5 + $0x48] sm:$0xff] %v2008_v28 }
 0x3a4   :  { %2289 = vst [vmem:[#allocation5 + $0x40] sm:$0xff] %v2003_v42  ;;  %v2715_v41 = vpop.f32.mrb[192].mxu0 }
 0x3a5   :  { %v1968_v5 = vadd.f32 %v2715_v41, %v4081_v26  ;;  %v1962_v49 = vpop.f32.mrb[193].mxu0  ;;  %2807 = vmatmul.mubr.f32.gmra.mrb[184].mxu1 %v1872_v57 }
 0x3a6   :  { %v1963_v2 = vadd.f32 %v4081_v26, %v1962_v49 }
 0x3a7   :  { %2282 = vst [vmem:[#allocation5 + $0x8] sm:$0xff] %v1968_v5 }
 0x3a8   :  { %2281 = vst [vmem:[#allocation5] sm:$0xff] %v1963_v2  ;;  %v2718_v43 = vpop.f32.mrb[194].mxu0  ;;  %v2730_v55 = vpop.f32.mrb[132].mxu1 }
 0x3a9   :  { %v1978_v48 = vadd.f32 %v2718_v43, %v4081_v26  ;;  %v2018_v33 = vadd.f32 %v2730_v55, %v4081_v26  ;;  %v1972_v53 = vpop.f32.mrb[195].mxu0  ;;  %v2012_v8 = vpop.f32.mrb[133].mxu1 }
 0x3aa   :  { %v1973_v52 = vadd.f32 %v4081_v26, %v1972_v53  ;;  %v2013_v16 = vadd.f32 %v4081_v26, %v2012_v8 }
 0x3ab   :  { %2284 = vst [vmem:[#allocation5 + $0x18] sm:$0xff] %v1978_v48  ;;  %2292 = vst [vmem:[#allocation5 + $0x58] sm:$0xff] %v2018_v33 }
 0x3ac   :  { %2283 = vst [vmem:[#allocation5 + $0x10] sm:$0xff] %v1973_v52  ;;  %2291 = vst [vmem:[#allocation5 + $0x50] sm:$0xff] %v2013_v16  ;;  %v2721_v40 = vpop.f32.mrb[196].mxu0 }
 0x3ad   :  { %v1988_v61 = vadd.f32 %v2721_v40, %v4081_v26  ;;  %v1982_v6 = vpop.f32.mrb[197].mxu0 }
 0x3ae   :  { %v1983_v54 = vadd.f32 %v4081_v26, %v1982_v6 }
 0x3af   :  { %2286 = vst [vmem:[#allocation5 + $0x28] sm:$0xff] %v1988_v61 }
 0x3b0   :  { %2285 = vst [vmem:[#allocation5 + $0x20] sm:$0xff] %v1983_v54  ;;  %v2733_v60 = vpop.f32.mrb[134].mxu1 }
 0x3b1   :  { %v2028_v22 = vadd.f32 %v2733_v60, %v4081_v26  ;;  %v2022_v58 = vpop.f32.mrb[135].mxu1 }
 0x3b2   :  { %v2023_v1 = vadd.f32 %v4081_v26, %v2022_v58 }
 0x3b3   :  { %2294 = vst [vmem:[#allocation5 + $0x68] sm:$0xff] %v2028_v22 }
 0x3b4   :  { %2293 = vst [vmem:[#allocation5 + $0x60] sm:$0xff] %v2023_v1 }
 0x3b8   :  { %v2736_v63 = vpop.f32.mrb[136].mxu1 }
 0x3b9   :  { %v2038_v59 = vadd.f32 %v2736_v63, %v4081_v26  ;;  %v2032_v7 = vpop.f32.mrb[137].mxu1 }
 0x3ba   :  { %v2033_v37 = vadd.f32 %v4081_v26, %v2032_v7 }
 0x3bb   :  { %2296 = vst [vmem:[#allocation5 + $0x78] sm:$0xff] %v2038_v59 }
 0x3bc   :  { %2295 = vst [vmem:[#allocation5 + $0x70] sm:$0xff] %v2033_v37 }
 0x3c0   :  { %v2739_v15 = vpop.f32.mrb[138].mxu1 }
 0x3c1   :  { %v2048_v39 = vadd.f32 %v2739_v15, %v4081_v26  ;;  %v2042_v47 = vpop.f32.mrb[139].mxu1 }
 0x3c2   :  { %v2043_v10 = vadd.f32 %v4081_v26, %v2042_v47 }
 0x3c3   :  { %2298 = vst [vmem:[#allocation5 + $0x88] sm:$0xff] %v2048_v39 }
 0x3c4   :  { %2297 = vst [vmem:[#allocation5 + $0x80] sm:$0xff] %v2043_v10 }
 0x3c8   :  { %v2742_v27 = vpop.f32.mrb[140].mxu1 }
 0x3c9   :  { %v2058_v11 = vadd.f32 %v2742_v27, %v4081_v26  ;;  %v2052_v9 = vpop.f32.mrb[141].mxu1 }
 0x3ca   :  { %v2053_v32 = vadd.f32 %v4081_v26, %v2052_v9 }
 0x3cb   :  { %2300 = vst [vmem:[#allocation5 + $0x98] sm:$0xff] %v2058_v11 }
 0x3cc   :  { %2299 = vst [vmem:[#allocation5 + $0x90] sm:$0xff] %v2053_v32 }
 0x3d0   :  { %v2745_v13 = vpop.f32.mrb[142].mxu1 }
 0x3d1   :  { %v2068_v12 = vadd.f32 %v2745_v13, %v4081_v26  ;;  %v2062_v21 = vpop.f32.mrb[143].mxu1 }
 0x3d2   :  { %v2063_v45 = vadd.f32 %v4081_v26, %v2062_v21 }
 0x3d3   :  { %2302 = vst [vmem:[#allocation5 + $0xa8] sm:$0xff] %v2068_v12 }
 0x3d4   :  { %2301 = vst [vmem:[#allocation5 + $0xa0] sm:$0xff] %v2063_v45 }
 0x3d8   :  { %v2748_v17 = vpop.f32.mrb[144].mxu1 }
 0x3d9   :  { %v2078_v19 = vadd.f32 %v2748_v17, %v4081_v26  ;;  %v2072_v0 = vpop.f32.mrb[145].mxu1 }
 0x3da   :  { %v2073_v35 = vadd.f32 %v4081_v26, %v2072_v0 }
 0x3db   :  { %2304 = vst [vmem:[#allocation5 + $0xb8] sm:$0xff] %v2078_v19 }
 0x3dc   :  { %2303 = vst [vmem:[#allocation5 + $0xb0] sm:$0xff] %v2073_v35 }
 0x3e0   :  { %v2751_v20 = vpop.f32.mrb[146].mxu1 }
 0x3e1   :  { %v2088_v18 = vadd.f32 %v2751_v20, %v4081_v26  ;;  %v2082_v24 = vpop.f32.mrb[147].mxu1 }
 0x3e2   :  { %v2083_v46 = vadd.f32 %v4081_v26, %v2082_v24 }
 0x3e3   :  { %2306 = vst [vmem:[#allocation5 + $0xc8] sm:$0xff] %v2088_v18 }
 0x3e4   :  { %2305 = vst [vmem:[#allocation5 + $0xc0] sm:$0xff] %v2083_v46 }
 0x3e8   :  { %v2754_v14 = vpop.f32.mrb[148].mxu1 }
 0x3e9   :  { %v2098_v51 = vadd.f32 %v2754_v14, %v4081_v26  ;;  %v2092_v25 = vpop.f32.mrb[149].mxu1 }
 0x3ea   :  { %v2093_v44 = vadd.f32 %v4081_v26, %v2092_v25 }
 0x3eb   :  { %2308 = vst [vmem:[#allocation5 + $0xd8] sm:$0xff] %v2098_v51 }
 0x3ec   :  { %2307 = vst [vmem:[#allocation5 + $0xd0] sm:$0xff] %v2093_v44 }
 0x3f0   :  { %v2757_v30 = vpop.f32.mrb[150].mxu1 }
 0x3f1   :  { %v2108_v56 = vadd.f32 %v2757_v30, %v4081_v26  ;;  %v2102_v23 = vpop.f32.mrb[151].mxu1 }
 0x3f2   :  { %v2103_v31 = vadd.f32 %v4081_v26, %v2102_v23 }
 0x3f3   :  { %2310 = vst [vmem:[#allocation5 + $0xe8] sm:$0xff] %v2108_v56 }
 0x3f4   :  { %2309 = vst [vmem:[#allocation5 + $0xe0] sm:$0xff] %v2103_v31 }
 0x3f8   :  { %v2760_v29 = vpop.f32.mrb[152].mxu1 }
 0x3f9   :  { %v2118_v50 = vadd.f32 %v2760_v29, %v4081_v26  ;;  %v2112_v62 = vpop.f32.mrb[153].mxu1 }
 0x3fa   :  { %v2113_v38 = vadd.f32 %v4081_v26, %v2112_v62 }
 0x3fb   :  { %2312 = vst [vmem:[#allocation5 + $0xf8] sm:$0xff] %v2118_v50 }
 0x3fc   :  { %2311 = vst [vmem:[#allocation5 + $0xf0] sm:$0xff] %v2113_v38 }
 0x400   :  { %v2763_v3 = vpop.f32.mrb[154].mxu1 }
 0x401   :  { %v2128_v36 = vadd.f32 %v2763_v3, %v4081_v26  ;;  %v2122_v28 = vpop.f32.mrb[155].mxu1 }
 0x402   :  { %v2123_v34 = vadd.f32 %v4081_v26, %v2122_v28 }
 0x403   :  { %2314 = vst [vmem:[#allocation5 + $0x108] sm:$0xff] %v2128_v36 }
 0x404   :  { %2313 = vst [vmem:[#allocation5 + $0x100] sm:$0xff] %v2123_v34 }
 0x408   :  { %v2766_v4 = vpop.f32.mrb[156].mxu1 }
 0x409   :  { %v2138_v42 = vadd.f32 %v2766_v4, %v4081_v26  ;;  %v2132_v57 = vpop.f32.mrb[157].mxu1 }
 0x40a   :  { %v2133_v41 = vadd.f32 %v4081_v26, %v2132_v57 }
 0x40b   :  { %2316 = vst [vmem:[#allocation5 + $0x118] sm:$0xff] %v2138_v42 }
 0x40c   :  { %2315 = vst [vmem:[#allocation5 + $0x110] sm:$0xff] %v2133_v41 }
 0x410   :  { %v2769_v5 = vpop.f32.mrb[158].mxu1 }
 0x411   :  { %v2148_v49 = vadd.f32 %v2769_v5, %v4081_v26  ;;  %v2142_v2 = vpop.f32.mrb[159].mxu1 }
 0x412   :  { %v2143_v43 = vadd.f32 %v4081_v26, %v2142_v2 }
 0x413   :  { %2318 = vst [vmem:[#allocation5 + $0x128] sm:$0xff] %v2148_v49 }
 0x414   :  { %2317 = vst [vmem:[#allocation5 + $0x120] sm:$0xff] %v2143_v43 }
 0x418   :  { %v2772_v55 = vpop.f32.mrb[160].mxu1 }
 0x419   :  { %v2158_v48 = vadd.f32 %v2772_v55, %v4081_v26  ;;  %v2152_v33 = vpop.f32.mrb[161].mxu1 }
 0x41a   :  { %v2153_v53 = vadd.f32 %v4081_v26, %v2152_v33 }
 0x41b   :  { %2320 = vst [vmem:[#allocation5 + $0x138] sm:$0xff] %v2158_v48 }
 0x41c   :  { %2319 = vst [vmem:[#allocation5 + $0x130] sm:$0xff] %v2153_v53 }
 0x420   :  { %v2775_v8 = vpop.f32.mrb[162].mxu1 }
 0x421   :  { %v2168_v52 = vadd.f32 %v2775_v8, %v4081_v26  ;;  %v2162_v16 = vpop.f32.mrb[163].mxu1 }
 0x422   :  { %v2163_v40 = vadd.f32 %v4081_v26, %v2162_v16 }
 0x423   :  { %2322 = vst [vmem:[#allocation5 + $0x148] sm:$0xff] %v2168_v52 }
 0x424   :  { %2321 = vst [vmem:[#allocation5 + $0x140] sm:$0xff] %v2163_v40 }
 0x428   :  { %v2778_v61 = vpop.f32.mrb[164].mxu1 }
 0x429   :  { %v2178_v6 = vadd.f32 %v2778_v61, %v4081_v26  ;;  %v2172_v54 = vpop.f32.mrb[165].mxu1 }
 0x42a   :  { %v2173_v60 = vadd.f32 %v4081_v26, %v2172_v54 }
 0x42b   :  { %2324 = vst [vmem:[#allocation5 + $0x158] sm:$0xff] %v2178_v6 }
 0x42c   :  { %2323 = vst [vmem:[#allocation5 + $0x150] sm:$0xff] %v2173_v60 }
 0x430   :  { %v2781_v22 = vpop.f32.mrb[166].mxu1 }
 0x431   :  { %v2188_v58 = vadd.f32 %v2781_v22, %v4081_v26  ;;  %v2182_v1 = vpop.f32.mrb[167].mxu1 }
 0x432   :  { %v2183_v63 = vadd.f32 %v4081_v26, %v2182_v1 }
 0x433   :  { %2326 = vst [vmem:[#allocation5 + $0x168] sm:$0xff] %v2188_v58 }
 0x434   :  { %2325 = vst [vmem:[#allocation5 + $0x160] sm:$0xff] %v2183_v63 }
 0x438   :  { %v2784_v59 = vpop.f32.mrb[168].mxu1 }
 0x439   :  { %v2198_v7 = vadd.f32 %v2784_v59, %v4081_v26  ;;  %v2192_v37 = vpop.f32.mrb[169].mxu1 }
 0x43a   :  { %v2193_v15 = vadd.f32 %v4081_v26, %v2192_v37 }
 0x43b   :  { %2328 = vst [vmem:[#allocation5 + $0x178] sm:$0xff] %v2198_v7 }
 0x43c   :  { %2327 = vst [vmem:[#allocation5 + $0x170] sm:$0xff] %v2193_v15 }
 0x440   :  { %v2787_v39 = vpop.f32.mrb[170].mxu1 }
 0x441   :  { %v2208_v47 = vadd.f32 %v2787_v39, %v4081_v26  ;;  %v2202_v10 = vpop.f32.mrb[171].mxu1 }
 0x442   :  { %v2203_v27 = vadd.f32 %v4081_v26, %v2202_v10 }
 0x443   :  { %2330 = vst [vmem:[#allocation5 + $0x188] sm:$0xff] %v2208_v47 }
 0x444   :  { %2329 = vst [vmem:[#allocation5 + $0x180] sm:$0xff] %v2203_v27 }
 0x448   :  { %v2790_v11 = vpop.f32.mrb[172].mxu1 }
 0x449   :  { %v2218_v9 = vadd.f32 %v2790_v11, %v4081_v26  ;;  %v2212_v32 = vpop.f32.mrb[173].mxu1 }
 0x44a   :  { %v2213_v13 = vadd.f32 %v4081_v26, %v2212_v32 }
 0x44b   :  { %2332 = vst [vmem:[#allocation5 + $0x198] sm:$0xff] %v2218_v9 }
 0x44c   :  { %2331 = vst [vmem:[#allocation5 + $0x190] sm:$0xff] %v2213_v13 }
 0x450   :  { %v2793_v12 = vpop.f32.mrb[174].mxu1 }
 0x451   :  { %v2228_v21 = vadd.f32 %v2793_v12, %v4081_v26  ;;  %v2222_v45 = vpop.f32.mrb[175].mxu1 }
 0x452   :  { %v2223_v17 = vadd.f32 %v4081_v26, %v2222_v45 }
 0x453   :  { %2334 = vst [vmem:[#allocation5 + $0x1a8] sm:$0xff] %v2228_v21 }
 0x454   :  { %2333 = vst [vmem:[#allocation5 + $0x1a0] sm:$0xff] %v2223_v17 }
 0x458   :  { %v2796_v19 = vpop.f32.mrb[176].mxu1 }
 0x459   :  { %v2238_v0 = vadd.f32 %v2796_v19, %v4081_v26  ;;  %v2232_v35 = vpop.f32.mrb[177].mxu1 }
 0x45a   :  { %v2233_v20 = vadd.f32 %v4081_v26, %v2232_v35 }
 0x45b   :  { %2336 = vst [vmem:[#allocation5 + $0x1b8] sm:$0xff] %v2238_v0 }
 0x45c   :  { %2335 = vst [vmem:[#allocation5 + $0x1b0] sm:$0xff] %v2233_v20 }
 0x460   :  { %v2799_v18 = vpop.f32.mrb[178].mxu1 }
 0x461   :  { %v2248_v24 = vadd.f32 %v2799_v18, %v4081_v26  ;;  %v2242_v46 = vpop.f32.mrb[179].mxu1 }
 0x462   :  { %v2243_v14 = vadd.f32 %v4081_v26, %v2242_v46 }
 0x463   :  { %2338 = vst [vmem:[#allocation5 + $0x1c8] sm:$0xff] %v2248_v24 }
 0x464   :  { %2337 = vst [vmem:[#allocation5 + $0x1c0] sm:$0xff] %v2243_v14 }
 0x468   :  { %v2802_v51 = vpop.f32.mrb[180].mxu1 }
 0x469   :  { %v2258_v25 = vadd.f32 %v2802_v51, %v4081_v26  ;;  %v2252_v44 = vpop.f32.mrb[181].mxu1 }
 0x46a   :  { %v2253_v30 = vadd.f32 %v4081_v26, %v2252_v44 }
 0x46b   :  { %2340 = vst [vmem:[#allocation5 + $0x1d8] sm:$0xff] %v2258_v25 }
 0x46c   :  { %2339 = vst [vmem:[#allocation5 + $0x1d0] sm:$0xff] %v2253_v30 }
 0x470   :  { %v2805_v56 = vpop.f32.mrb[182].mxu1 }
 0x471   :  { %v2268_v23 = vadd.f32 %v2805_v56, %v4081_v26  ;;  %v2262_v31 = vpop.f32.mrb[183].mxu1 }
 0x472   :  { %v2263_v29 = vadd.f32 %v4081_v26, %v2262_v31 }
 0x473   :  { %2342 = vst [vmem:[#allocation5 + $0x1e8] sm:$0xff] %v2268_v23 }
 0x474   :  { %2341 = vst [vmem:[#allocation5 + $0x1e0] sm:$0xff] %v2263_v29 }
 0x478   :  { %v2808_v50 = vpop.f32.mrb[184].mxu1 }
 0x479   :  { %v2278_v62 = vadd.f32 %v2808_v50, %v4081_v26  ;;  %v2272_v38 = vpop.f32.mrb[185].mxu1 }
 0x47a   :  { %v2273_v3 = vadd.f32 %v4081_v26, %v2272_v38 }
 0x47b   :  { %2344 = vst [vmem:[#allocation5 + $0x1f8] sm:$0xff] %v2278_v62 }
 0x47c   :  { %2343 = vst [vmem:[#allocation5 + $0x1f0] sm:$0xff] %v2273_v3 }
 0x47d   :  { %2984 = shalt.err (!%p2981_p12)
}
 0x47e   :  { %s2985_s21 = scalar_lea.hbm %s4174_s9, 8192 }
 0x47f   :  { %p2986_p13 = scmp.ne.s32.totalorder %s4174_s9, %s2985_s21  ;;  %p2989_p0 = scmp.lt.u32.totalorder %s2985_s21, %s4174_s9 }
 0x481   :  { %p2991_p1 = pnand %p2989_p0, %p2986_p13 }
 0x483   :  { %2994 = shalt.err (!%p2991_p1)
}
 0x484   :  { %2356 = dma.vmem_to_hbm [thread:$0]  %s2351_s0, 8192, %s4174_s9, [#allocation4], %s3000_s19, %s3000_s19, %s3001_s20  }
 0x485   :  { %2997 = dma.done.wait [#allocation4], 8192  }
 0x486   :  { %2998 = vsyncadd [#allocation4], 4294959104 }
 0x487   :  { %2360 = vsyncpa [#allocation3], 1 }
 0x488   :  { %2361 = vsyncpa [#allocation4], 1 }

</bundles_post_ra>
